<compile_context>
chip_gen: v5e
topology: v5e:2x2
jax: 0.10.0
libtpu: 0.0.40
codegen_flags: <defaults>
</compile_context>

<pallas_src>
import jax
import jax.numpy as jnp
from jax.experimental import pallas as pl
from jax.experimental.pallas import tpu as pltpu

EPS = 1e-5


def _sanet_kernel(c_pm_ref,        # (1, tq, C) f32   content tile, pixel-major
                  g_ref,           # (1, C, tk) bf16  precomputed G tile (channel-major)
                  h_ref,           # (1, tk, C) bf16  precomputed H^T tile (pixel-major)
                  c_stats_ref,     # (1, 2, C)  f32   content [mean; inv-std] rows
                  wf_t_ref,        # (C, C)     bf16  f-conv weight, transposed
                  wo_t_ref,        # (C, C)     bf16  out-conv weight, transposed
                  b_fo_ref,        # (2, C)     f32   packed [bf, bo] rows
                  out_ref,         # (1, tq, C) f32   output tile, pixel-major
                  f_scratch,       # VMEM (tq, C) bf16 : F tile (resident over kv)
                  m_scratch,       # VMEM (tq, 1) f32  : running max
                  l_scratch,       # VMEM (tq, 1) f32  : running denom
                  acc_scratch):    # VMEM (tq, C) f32  : output accumulator
    ki = pl.program_id(2)
    nk = pl.num_programs(2)

    # ------------- init: compute F tile once per (batch, q-tile) ------------
    @pl.when(ki == 0)
    def _init():
        x = c_pm_ref[0]                                   # (tq, C) f32
        cs = c_stats_ref[0]                               # (2, C)
        xn = ((x - cs[0:1, :]) * cs[1:2, :]).astype(jnp.bfloat16)
        f = jnp.dot(xn, wf_t_ref[...],
                    preferred_element_type=jnp.float32) + b_fo_ref[0:1, :]
        f_scratch[...] = f.astype(jnp.bfloat16)
        m_scratch[...] = jnp.full(m_scratch.shape, -jnp.inf, jnp.float32)
        l_scratch[...] = jnp.zeros(l_scratch.shape, jnp.float32)
        acc_scratch[...] = jnp.zeros(acc_scratch.shape, jnp.float32)

    # ------------------ online-softmax attention update ---------------------
    s_tile = jnp.dot(f_scratch[...], g_ref[0],
                     preferred_element_type=jnp.float32)              # (tq, tk)
    m_prev = m_scratch[...]
    m_new = jnp.maximum(m_prev, jnp.max(s_tile, axis=-1, keepdims=True))
    alpha = jnp.exp(m_prev - m_new)                                   # f32
    p = jnp.exp(s_tile - m_new)                                       # f32
    l_scratch[...] = alpha * l_scratch[...] + jnp.sum(p, axis=-1, keepdims=True)
    acc_scratch[...] = alpha * acc_scratch[...] + jnp.dot(
        p.astype(jnp.bfloat16), h_ref[0],
        preferred_element_type=jnp.float32)                           # (tq, C)
    m_scratch[...] = m_new

    # ------------- finalize: normalize, out-conv, residual ------------------
    @pl.when(ki == nk - 1)
    def _finalize():
        o = acc_scratch[...] * pl.reciprocal(l_scratch[...], approx=True)
        o = jnp.dot(o.astype(jnp.bfloat16), wo_t_ref[...],
                    preferred_element_type=jnp.float32) + b_fo_ref[1:2, :]
        out_ref[0] = (o + c_pm_ref[0]).astype(out_ref.dtype)


def _hw_config():
    """Trace-time chip query -> (max_tq, vmem_limit_bytes, small_vmem_chip)."""
    try:
        vmem_cap = int(pltpu.get_tpu_info().vmem_capacity_bytes)
    except Exception:
        vmem_cap = 64 * 1024 * 1024          # conservative fallback (v7x-class)
    small_vmem = vmem_cap <= 64 * 1024 * 1024
    if small_vmem:                            # v7x: 64 MiB VMEM / TC, 2 TCs
        return 1024, 44 * 1024 * 1024, True
    return 2048, 100 * 1024 * 1024, False     # v5e / v6e: 128 MiB VMEM, 1 TC


def _pick_tile(length, max_tile):
    t = max_tile
    while t >= 128:
        if length % t == 0:
            return t
        t //= 2
    return length  # small / odd spatial sizes: whole axis (still valid)


def sanet_forward(content, style, params, *, tq=None, tk=None):
    """content/style: (B, C, H, W) float32; params: dict of 1x1-conv weights."""
    B, C, Hc, Wc = content.shape
    _, _, Hs, Ws = style.shape
    Lc, Ls = Hc * Wc, Hs * Ws

    max_tq, vmem_limit, two_core = _hw_config()
    tq = _pick_tile(Lc, max_tq) if tq is None else tq
    tk = _pick_tile(Ls, 512) if tk is None else tk
    # v7x: 2 TensorCores -> prefer an even number of (batch, q-tile) work items
    if two_core and tq > 128 and (B * (Lc // tq)) % 2 == 1 and Lc % (tq // 2) == 0:
        tq //= 2
    assert Lc % tq == 0 and Ls % tk == 0
    nq, nk = Lc // tq, Ls // tk

    f32, bf16 = jnp.float32, jnp.bfloat16

    c_cm = content.reshape(B, C, Lc).astype(f32)           # (B, C, Lc)
    s_cm = style.reshape(B, C, Ls).astype(f32)              # (B, C, Ls)
    c_pm = c_cm.transpose(0, 2, 1)                           # (B, Lc, C)

    # per-(batch, channel) content mean / inv-std (torch: unbiased var, +eps)
    c_mean = c_cm.mean(axis=2)
    c_istd = 1.0 / jnp.sqrt(c_cm.var(axis=2, ddof=1) + EPS)
    c_stats = jnp.stack([c_mean, c_istd], axis=1)            # (B, 2, C)

    # ----- hoisted style projections (computed once, streamed in bf16) ------
    s_mean = s_cm.mean(axis=2, keepdims=True)
    s_istd = 1.0 / jnp.sqrt(s_cm.var(axis=2, ddof=1, keepdims=True) + EPS)
    sn_cm = (s_cm - s_mean) * s_istd                         # mvn(style), (B, C, Ls)
    # G = wg @ mvn(style) + bg        -> channel-major (B, C, Ls)
    g_cm = (jnp.einsum('oc,bcl->bol', params['wg'].astype(f32), sn_cm)
            + params['bg'].astype(f32)[None, :, None]).astype(bf16)
    # H^T = style^T @ wh^T + bh       -> pixel-major (B, Ls, C)
    h_pm = (jnp.einsum('bcl,oc->blo', s_cm, params['wh'].astype(f32))
            + params['bh'].astype(f32)[None, None, :]).astype(bf16)

    wf_t = params['wf'].T.astype(bf16)                       # (C, C)
    wo_t = params['wo'].T.astype(bf16)                       # (C, C)
    b_fo = jnp.stack([params['bf'], params['bo']], axis=0).astype(f32)   # (2, C)

    const2d = lambda b, q, k: (0, 0)

    grid_spec = pltpu.PrefetchScalarGridSpec(
        num_scalar_prefetch=0,
        grid=(B, nq, nk),
        in_specs=[
            pl.BlockSpec((1, tq, C), lambda b, q, k: (b, q, 0)),   # content (pm, f32)
            pl.BlockSpec((1, C, tk), lambda b, q, k: (b, 0, k)),   # G (cm, bf16)
            pl.BlockSpec((1, tk, C), lambda b, q, k: (b, k, 0)),   # H^T (pm, bf16)
            pl.BlockSpec((1, 2, C), lambda b, q, k: (b, 0, 0)),    # content stats
            pl.BlockSpec((C, C), const2d),                         # wf^T (bf16)
            pl.BlockSpec((C, C), const2d),                         # wo^T (bf16)
            pl.BlockSpec((2, C), const2d),                         # packed [bf, bo]
        ],
        out_specs=pl.BlockSpec((1, tq, C), lambda b, q, k: (b, q, 0)),
        scratch_shapes=[
            pltpu.VMEM((tq, C), jnp.bfloat16),   # F tile
            pltpu.VMEM((tq, 1), jnp.float32),    # running max
            pltpu.VMEM((tq, 1), jnp.float32),    # running denom
            pltpu.VMEM((tq, C), jnp.float32),    # output accumulator
        ],
    )

    flops = int(4 * B * Lc * Ls * C           # S = F@G and acc += P@H^T
                + 4 * B * Lc * C * C)         # F projection + out-conv
    transcendentals = int(B * Lc * Ls + B * Lc * nk)
    bytes_accessed = int(4 * B * Lc * C * 2               # content in + out (f32)
                         + 2 * B * nq * Ls * C * 2        # G + H^T re-streamed (bf16)
                         + 2 * 2 * C * C                  # weights (bf16)
                         + 4 * (2 * C + 2 * B * C))       # biases + stats

    out_pm = pl.pallas_call(
        _sanet_kernel,
        out_shape=jax.ShapeDtypeStruct((B, Lc, C), jnp.float32),
        grid_spec=grid_spec,
        compiler_params=pltpu.CompilerParams(
            dimension_semantics=("parallel", "parallel", "arbitrary"),
            vmem_limit_bytes=vmem_limit),
        cost_estimate=pl.CostEstimate(flops=flops,
                                      transcendentals=transcendentals,
                                      bytes_accessed=bytes_accessed),
    )(c_pm, g_cm, h_pm, c_stats, wf_t, wo_t, b_fo)

    # TODO(synk): if the downstream consumer accepts pixel-major features,
    # return out_pm directly and skip this extra HBM transpose pass.
    return out_pm.transpose(0, 2, 1).reshape(B, C, Hc, Wc)


# ---------------- pure-JAX reference (for correctness check) ----------------

def _mvn_ref(x):
    B, C = x.shape[:2]
    v = x.reshape(B, C, -1)
    mean = v.mean(axis=2)
    var = v.var(axis=2, ddof=1) + EPS
    std = jnp.sqrt(var)
    return (x - mean[:, :, None, None]) / std[:, :, None, None]


def _conv1x1_ref(x, w, b):
    return jnp.einsum('oc,bchw->bohw', w, x) + b[None, :, None, None]


def sanet_ref(content, style, p):
    F = _conv1x1_ref(_mvn_ref(content), p["wf"], p["bf"])
    G = _conv1x1_ref(_mvn_ref(style), p["wg"], p["bg"])
    H = _conv1x1_ref(style, p["wh"], p["bh"])
    B, C, h, w = F.shape
    Fv = F.reshape(B, C, h * w).transpose(0, 2, 1)          # (B, Lc, C)
    Gv = G.reshape(B, C, -1)                                # (B, C, Ls)
    S = jnp.einsum('blc,bcm->blm', Fv, Gv)                  # (B, Lc, Ls)
    S = jax.nn.softmax(S, axis=-1)
    Hv = H.reshape(B, C, -1)                                # (B, C, Ls)
    O = jnp.einsum('bcm,blm->bcl', Hv, S)                   # (B, C, Lc)
    O = O.reshape(content.shape)
    O = _conv1x1_ref(O, p["wo"], p["bo"])
    return O + content


if __name__ == "__main__":
    B, C, Hc, Wc = 2, 4, 16, 16
    Hs, Ws = 16, 16

    key = jax.random.PRNGKey(0)
    keys = jax.random.split(key, 10)
    content = jax.random.normal(keys[0], (B, C, Hc, Wc), jnp.float32)
    style = jax.random.normal(keys[1], (B, C, Hs, Ws), jnp.float32)

    params = {
        "wf": jax.random.normal(keys[2], (C, C), jnp.float32) * 0.1,
        "bf": jax.random.normal(keys[3], (C,), jnp.float32) * 0.01,
        "wg": jax.random.normal(keys[4], (C, C), jnp.float32) * 0.1,
        "bg": jax.random.normal(keys[5], (C,), jnp.float32) * 0.01,
        "wh": jax.random.normal(keys[6], (C, C), jnp.float32) * 0.1,
        "bh": jax.random.normal(keys[7], (C,), jnp.float32) * 0.01,
        "wo": jax.random.normal(keys[8], (C, C), jnp.float32) * 0.1,
        "bo": jax.random.normal(keys[9], (C,), jnp.float32) * 0.01,
    }

    # tq/tk = 128 so the test exercises multi-tile online softmax (grid 2x2x2)
    out = sanet_forward(content, style, params, tq=128, tk=128)
    out = jax.block_until_ready(out)

    ref = sanet_ref(content, style, params)
    assert out.shape == ref.shape == (B, C, Hc, Wc)
    # bf16 MXU operands (f32 accumulation) + approx reciprocal -> ~1e-2 class
    err = float(jnp.max(jnp.abs(out - ref)))
    assert jnp.allclose(out, ref, rtol=2e-2, atol=2e-2), err

    print("KERNEL_OK")
</pallas_src>

<mosaic_0001>
module attributes {stable_mosaic.version = 11 : i64} {
  func.func @_sanet_kernel(%arg0: i32, %arg1: i32, %arg2: i32, %arg3: memref<1x128x4xf32, #tpu.memory_space<vmem>>, %arg4: memref<1x4x128xbf16, #tpu.memory_space<vmem>>, %arg5: memref<1x128x4xbf16, #tpu.memory_space<vmem>>, %arg6: memref<1x2x4xf32, #tpu.memory_space<vmem>>, %arg7: memref<4x4xbf16, #tpu.memory_space<vmem>>, %arg8: memref<4x4xbf16, #tpu.memory_space<vmem>>, %arg9: memref<2x4xf32, #tpu.memory_space<vmem>>, %arg10: memref<1x128x4xf32, #tpu.memory_space<vmem>>, %arg11: memref<128x4xbf16, #tpu.memory_space<vmem>>, %arg12: memref<128x1xf32, #tpu.memory_space<vmem>>, %arg13: memref<128x1xf32, #tpu.memory_space<vmem>>, %arg14: memref<128x4xf32, #tpu.memory_space<vmem>>) attributes {dimension_semantics = [#tpu.dimension_semantics<parallel>, #tpu.dimension_semantics<parallel>, #tpu.dimension_semantics<arbitrary>], iteration_bounds = array<i64: 2, 2, 2>, scalar_prefetch = 0 : i64, scratch_operands = 4 : i64, tpu.core_type = #tpu.core_type<tc>, window_params = [{transform_indices = @transform_0, window_bounds = array<i64: 1, 128, 4>}, {transform_indices = @transform_1, window_bounds = array<i64: 1, 4, 128>}, {transform_indices = @transform_2, window_bounds = array<i64: 1, 128, 4>}, {transform_indices = @transform_3, window_bounds = array<i64: 1, 2, 4>}, {pipeline_mode = #tpu.pipeline_mode<synchronous>, transform_indices = @transform_4, window_bounds = array<i64: 4, 4>}, {pipeline_mode = #tpu.pipeline_mode<synchronous>, transform_indices = @transform_5, window_bounds = array<i64: 4, 4>}, {pipeline_mode = #tpu.pipeline_mode<synchronous>, transform_indices = @transform_6, window_bounds = array<i64: 2, 4>}, {transform_indices = @transform_7, window_bounds = array<i64: 1, 128, 4>}]} {
    %c0_i32 = arith.constant 0 : i32
    %0 = arith.cmpi eq, %arg2, %c0_i32 : i32
    %1 = arith.extui %0 : i1 to i32
    %c0_i32_0 = arith.constant 0 : i32
    %2 = arith.cmpi ne, %1, %c0_i32_0 : i32
    scf.if %2 {
      %c0_24 = arith.constant 0 : index
      %c0_25 = arith.constant 0 : index
      %c0_26 = arith.constant 0 : index
      %35 = vector.load %arg3[%c0_24, %c0_25, %c0_26] : memref<1x128x4xf32, #tpu.memory_space<vmem>>, vector<1x128x4xf32>
      %36 = vector.shape_cast %35 : vector<1x128x4xf32> to vector<128x4xf32>
      %c0_27 = arith.constant 0 : index
      %c0_28 = arith.constant 0 : index
      %c0_29 = arith.constant 0 : index
      %37 = vector.load %arg6[%c0_27, %c0_28, %c0_29] : memref<1x2x4xf32, #tpu.memory_space<vmem>>, vector<1x2x4xf32>
      %38 = vector.shape_cast %37 : vector<1x2x4xf32> to vector<2x4xf32>
      %39 = vector.extract_strided_slice %38 {offsets = [0, 0], sizes = [1, 4], strides = [1, 1]} : vector<2x4xf32> to vector<1x4xf32>
      %40 = vector.broadcast %39 : vector<1x4xf32> to vector<128x4xf32>
      %41 = arith.subf %36, %40 : vector<128x4xf32>
      %42 = vector.extract_strided_slice %38 {offsets = [1, 0], sizes = [1, 4], strides = [1, 1]} : vector<2x4xf32> to vector<1x4xf32>
      %43 = vector.broadcast %42 : vector<1x4xf32> to vector<128x4xf32>
      %44 = arith.mulf %41, %43 : vector<128x4xf32>
      %45 = arith.truncf %44 : vector<128x4xf32> to vector<128x4xbf16>
      %c0_30 = arith.constant 0 : index
      %c0_31 = arith.constant 0 : index
      %46 = vector.load %arg7[%c0_30, %c0_31] : memref<4x4xbf16, #tpu.memory_space<vmem>>, vector<4x4xbf16>
      %cst_32 = arith.constant dense<0.000000e+00> : vector<128x4xf32>
      %47 = tpu.matmul %45, %46, %cst_32 {dimension_numbers = #tpu.dot_dimension_numbers<[1], [0], [0], [1], [0, 0, 1, 1], [], []>} : vector<128x4xbf16>, vector<4x4xbf16>, vector<128x4xf32> -> vector<128x4xf32>
      %c0_33 = arith.constant 0 : index
      %c0_34 = arith.constant 0 : index
      %48 = vector.load %arg9[%c0_33, %c0_34] : memref<2x4xf32, #tpu.memory_space<vmem>>, vector<1x4xf32>
      %49 = vector.broadcast %48 : vector<1x4xf32> to vector<128x4xf32>
      %50 = arith.addf %47, %49 : vector<128x4xf32>
      %51 = arith.truncf %50 : vector<128x4xf32> to vector<128x4xbf16>
      %c0_35 = arith.constant 0 : index
      %c0_36 = arith.constant 0 : index
      %52 = vector.load %arg11[%c0_35, %c0_36] : memref<128x4xbf16, #tpu.memory_space<vmem>>, vector<128x4xbf16>
      tpu.vector_store %arg11[%c0_35, %c0_36], %51 {strides = array<i32>} : memref<128x4xbf16, #tpu.memory_space<vmem>>, vector<128x4xbf16>,
      %cst_37 = arith.constant 0xFF800000 : f32
      %53 = vector.broadcast %cst_37 : f32 to vector<128x1xf32>
      %c0_38 = arith.constant 0 : index
      %c0_39 = arith.constant 0 : index
      %54 = vector.load %arg12[%c0_38, %c0_39] : memref<128x1xf32, #tpu.memory_space<vmem>>, vector<128x1xf32>
      tpu.vector_store %arg12[%c0_38, %c0_39], %53 {strides = array<i32>} : memref<128x1xf32, #tpu.memory_space<vmem>>, vector<128x1xf32>,
      %cst_40 = arith.constant 0.000000e+00 : f32
      %55 = vector.broadcast %cst_40 : f32 to vector<128x1xf32>
      %c0_41 = arith.constant 0 : index
      %c0_42 = arith.constant 0 : index
      %56 = vector.load %arg13[%c0_41, %c0_42] : memref<128x1xf32, #tpu.memory_space<vmem>>, vector<128x1xf32>
      tpu.vector_store %arg13[%c0_41, %c0_42], %55 {strides = array<i32>} : memref<128x1xf32, #tpu.memory_space<vmem>>, vector<128x1xf32>,
      %cst_43 = arith.constant 0.000000e+00 : f32
      %57 = vector.broadcast %cst_43 : f32 to vector<128x4xf32>
      %c0_44 = arith.constant 0 : index
      %c0_45 = arith.constant 0 : index
      %58 = vector.load %arg14[%c0_44, %c0_45] : memref<128x4xf32, #tpu.memory_space<vmem>>, vector<128x4xf32>
      tpu.vector_store %arg14[%c0_44, %c0_45], %57 {strides = array<i32>} : memref<128x4xf32, #tpu.memory_space<vmem>>, vector<128x4xf32>,
    } else {
    }
    %c0 = arith.constant 0 : index
    %c0_1 = arith.constant 0 : index
    %3 = vector.load %arg11[%c0, %c0_1] : memref<128x4xbf16, #tpu.memory_space<vmem>>, vector<128x4xbf16>
    %c0_2 = arith.constant 0 : index
    %c0_3 = arith.constant 0 : index
    %c0_4 = arith.constant 0 : index
    %4 = vector.load %arg4[%c0_2, %c0_3, %c0_4] : memref<1x4x128xbf16, #tpu.memory_space<vmem>>, vector<1x4x128xbf16>
    %5 = vector.shape_cast %4 : vector<1x4x128xbf16> to vector<4x128xbf16>
    %cst = arith.constant dense<0.000000e+00> : vector<128x128xf32>
    %6 = tpu.matmul %3, %5, %cst {dimension_numbers = #tpu.dot_dimension_numbers<[1], [0], [0], [1], [0, 0, 1, 1], [], []>} : vector<128x4xbf16>, vector<4x128xbf16>, vector<128x128xf32> -> vector<128x128xf32>
    %c0_5 = arith.constant 0 : index
    %c0_6 = arith.constant 0 : index
    %7 = vector.load %arg12[%c0_5, %c0_6] : memref<128x1xf32, #tpu.memory_space<vmem>>, vector<128x1xf32>
    %cst_7 = arith.constant dense<0xFF800000> : vector<128xf32>
    %8 = vector.multi_reduction <maximumf>, %6, %cst_7 [1] : vector<128x128xf32> to vector<128xf32>
    %9 = vector.shape_cast %8 : vector<128xf32> to vector<128x1xf32>
    %10 = arith.maximumf %7, %9 : vector<128x1xf32>
    %11 = arith.subf %7, %10 : vector<128x1xf32>
    %12 = math.exp %11 : vector<128x1xf32>
    %13 = vector.broadcast %10 : vector<128x1xf32> to vector<128x128xf32>
    %14 = arith.subf %6, %13 : vector<128x128xf32>
    %15 = math.exp %14 : vector<128x128xf32>
    %c0_8 = arith.constant 0 : index
    %c0_9 = arith.constant 0 : index
    %16 = vector.load %arg13[%c0_8, %c0_9] : memref<128x1xf32, #tpu.memory_space<vmem>>, vector<128x1xf32>
    %17 = arith.mulf %12, %16 : vector<128x1xf32>
    %cst_10 = arith.constant dense<0.000000e+00> : vector<128xf32>
    %18 = vector.multi_reduction <add>, %15, %cst_10 [1] : vector<128x128xf32> to vector<128xf32>
    %19 = vector.shape_cast %18 : vector<128xf32> to vector<128x1xf32>
    %20 = arith.addf %17, %19 : vector<128x1xf32>
    %c0_11 = arith.constant 0 : index
    %c0_12 = arith.constant 0 : index
    %21 = vector.load %arg13[%c0_11, %c0_12] : memref<128x1xf32, #tpu.memory_space<vmem>>, vector<128x1xf32>
    tpu.vector_store %arg13[%c0_11, %c0_12], %20 {strides = array<i32>} : memref<128x1xf32, #tpu.memory_space<vmem>>, vector<128x1xf32>,
    %c0_13 = arith.constant 0 : index
    %c0_14 = arith.constant 0 : index
    %22 = vector.load %arg14[%c0_13, %c0_14] : memref<128x4xf32, #tpu.memory_space<vmem>>, vector<128x4xf32>
    %23 = vector.broadcast %12 : vector<128x1xf32> to vector<128x4xf32>
    %24 = arith.mulf %23, %22 : vector<128x4xf32>
    %25 = arith.truncf %15 : vector<128x128xf32> to vector<128x128xbf16>
    %c0_15 = arith.constant 0 : index
    %c0_16 = arith.constant 0 : index
    %c0_17 = arith.constant 0 : index
    %26 = vector.load %arg5[%c0_15, %c0_16, %c0_17] : memref<1x128x4xbf16, #tpu.memory_space<vmem>>, vector<1x128x4xbf16>
    %27 = vector.shape_cast %26 : vector<1x128x4xbf16> to vector<128x4xbf16>
    %cst_18 = arith.constant dense<0.000000e+00> : vector<128x4xf32>
    %28 = tpu.matmul %25, %27, %cst_18 {dimension_numbers = #tpu.dot_dimension_numbers<[1], [0], [0], [1], [0, 0, 1, 1], [], []>} : vector<128x128xbf16>, vector<128x4xbf16>, vector<128x4xf32> -> vector<128x4xf32>
    %29 = arith.addf %24, %28 : vector<128x4xf32>
    %c0_19 = arith.constant 0 : index
    %c0_20 = arith.constant 0 : index
    %30 = vector.load %arg14[%c0_19, %c0_20] : memref<128x4xf32, #tpu.memory_space<vmem>>, vector<128x4xf32>
    tpu.vector_store %arg14[%c0_19, %c0_20], %29 {strides = array<i32>} : memref<128x4xf32, #tpu.memory_space<vmem>>, vector<128x4xf32>,
    %c0_21 = arith.constant 0 : index
    %c0_22 = arith.constant 0 : index
    %31 = vector.load %arg12[%c0_21, %c0_22] : memref<128x1xf32, #tpu.memory_space<vmem>>, vector<128x1xf32>
    tpu.vector_store %arg12[%c0_21, %c0_22], %10 {strides = array<i32>} : memref<128x1xf32, #tpu.memory_space<vmem>>, vector<128x1xf32>,
    %c1_i32 = arith.constant 1 : i32
    %32 = arith.cmpi eq, %arg2, %c1_i32 : i32
    %33 = arith.extui %32 : i1 to i32
    %c0_i32_23 = arith.constant 0 : i32
    %34 = arith.cmpi ne, %33, %c0_i32_23 : i32
    scf.if %34 {
      %c0_24 = arith.constant 0 : index
      %c0_25 = arith.constant 0 : index
      %35 = vector.load %arg14[%c0_24, %c0_25] : memref<128x4xf32, #tpu.memory_space<vmem>>, vector<128x4xf32>
      %c0_26 = arith.constant 0 : index
      %c0_27 = arith.constant 0 : index
      %36 = vector.load %arg13[%c0_26, %c0_27] : memref<128x1xf32, #tpu.memory_space<vmem>>, vector<128x1xf32>
      %37 = tpu.reciprocal %36 {approx = true} : vector<128x1xf32> -> vector<128x1xf32>
      %38 = vector.broadcast %37 : vector<128x1xf32> to vector<128x4xf32>
      %39 = arith.mulf %35, %38 : vector<128x4xf32>
      %40 = arith.truncf %39 : vector<128x4xf32> to vector<128x4xbf16>
      %c0_28 = arith.constant 0 : index
      %c0_29 = arith.constant 0 : index
      %41 = vector.load %arg8[%c0_28, %c0_29] : memref<4x4xbf16, #tpu.memory_space<vmem>>, vector<4x4xbf16>
      %cst_30 = arith.constant dense<0.000000e+00> : vector<128x4xf32>
      %42 = tpu.matmul %40, %41, %cst_30 {dimension_numbers = #tpu.dot_dimension_numbers<[1], [0], [0], [1], [0, 0, 1, 1], [], []>} : vector<128x4xbf16>, vector<4x4xbf16>, vector<128x4xf32> -> vector<128x4xf32>
      %c1 = arith.constant 1 : index
      %c0_31 = arith.constant 0 : index
      %43 = vector.load %arg9[%c1, %c0_31] : memref<2x4xf32, #tpu.memory_space<vmem>>, vector<1x4xf32>
      %44 = vector.broadcast %43 : vector<1x4xf32> to vector<128x4xf32>
      %45 = arith.addf %42, %44 : vector<128x4xf32>
      %c0_32 = arith.constant 0 : index
      %c0_33 = arith.constant 0 : index
      %c0_34 = arith.constant 0 : index
      %46 = vector.load %arg3[%c0_32, %c0_33, %c0_34] : memref<1x128x4xf32, #tpu.memory_space<vmem>>, vector<1x128x4xf32>
      %47 = vector.shape_cast %46 : vector<1x128x4xf32> to vector<128x4xf32>
      %48 = arith.addf %45, %47 : vector<128x4xf32>
      %c0_35 = arith.constant 0 : index
      %c0_36 = arith.constant 0 : index
      %c0_37 = arith.constant 0 : index
      %49 = vector.load %arg10[%c0_35, %c0_36, %c0_37] : memref<1x128x4xf32, #tpu.memory_space<vmem>>, vector<1x128x4xf32>
      %50 = vector.shape_cast %49 : vector<1x128x4xf32> to vector<128x4xf32>
      %51 = vector.shape_cast %48 : vector<128x4xf32> to vector<1x128x4xf32>
      tpu.vector_store %arg10[%c0_35, %c0_36, %c0_37], %51 {strides = array<i32>} : memref<1x128x4xf32, #tpu.memory_space<vmem>>, vector<1x128x4xf32>,
    } else {
    }
    return
  }
  func.func @transform_0(%arg0: i32, %arg1: i32, %arg2: i32) -> (i32, i32, i32) {
    %c0_i32 = arith.constant 0 : i32
    %c0_i32_0 = arith.constant 0 : i32
    return %arg0, %arg1, %c0_i32 : i32, i32, i32
  }
  func.func @transform_1(%arg0: i32, %arg1: i32, %arg2: i32) -> (i32, i32, i32) {
    %c0_i32 = arith.constant 0 : i32
    %c0_i32_0 = arith.constant 0 : i32
    return %arg0, %c0_i32, %arg2 : i32, i32, i32
  }
  func.func @transform_2(%arg0: i32, %arg1: i32, %arg2: i32) -> (i32, i32, i32) {
    %c0_i32 = arith.constant 0 : i32
    %c0_i32_0 = arith.constant 0 : i32
    return %arg0, %arg2, %c0_i32 : i32, i32, i32
  }
  func.func @transform_3(%arg0: i32, %arg1: i32, %arg2: i32) -> (i32, i32, i32) {
    %c0_i32 = arith.constant 0 : i32
    %c0_i32_0 = arith.constant 0 : i32
    %c0_i32_1 = arith.constant 0 : i32
    return %arg0, %c0_i32, %c0_i32_0 : i32, i32, i32
  }
  func.func @transform_4(%arg0: i32, %arg1: i32, %arg2: i32) -> (i32, i32) {
    %c0_i32 = arith.constant 0 : i32
    %c0_i32_0 = arith.constant 0 : i32
    %c0_i32_1 = arith.constant 0 : i32
    return %c0_i32, %c0_i32_0 : i32, i32
  }
  func.func @transform_5(%arg0: i32, %arg1: i32, %arg2: i32) -> (i32, i32) {
    %c0_i32 = arith.constant 0 : i32
    %c0_i32_0 = arith.constant 0 : i32
    %c0_i32_1 = arith.constant 0 : i32
    return %c0_i32, %c0_i32_0 : i32, i32
  }
  func.func @transform_6(%arg0: i32, %arg1: i32, %arg2: i32) -> (i32, i32) {
    %c0_i32 = arith.constant 0 : i32
    %c0_i32_0 = arith.constant 0 : i32
    %c0_i32_1 = arith.constant 0 : i32
    return %c0_i32, %c0_i32_0 : i32, i32
  }
  func.func @transform_7(%arg0: i32, %arg1: i32, %arg2: i32) -> (i32, i32, i32) {
    %c0_i32 = arith.constant 0 : i32
    %c0_i32_0 = arith.constant 0 : i32
    return %arg0, %arg1, %c0_i32 : i32, i32, i32
  }
}

</mosaic_0001>

<bundles_post_ra>
// kernel: tpu_custom_call.1
= control target key start
LH: loop header
LB: loop body
LE: loop exit
PB: predicated region body
PF: predicated region fallthrough
CT: control target
= control target key end

     0   :  { %s2220_s24 = smov 0   ;;  %s2222_s25 = smov 0   ;;  %s2926_s0 = inlined_call_operand.vmem [shape: f32[2,256,4], index: 0, kind: input, shape index: {}]   ;;  %s2927_s1 = inlined_call_operand.vmem [shape: bf16[2,4,256], index: 1, kind: input, shape index: {}]   ;;  %s2928_s2 = inlined_call_operand.vmem [shape: bf16[2,256,4], index: 2, kind: input, shape index: {}]   ;;  %s2929_s3 = inlined_call_operand.vmem [shape: f32[2,2,4], index: 3, kind: input, shape index: {}]   ;;  %s2930_s4 = inlined_call_operand.vmem [shape: bf16[4,4], index: 4, kind: input, shape index: {}]   ;;  %s2931_s5 = inlined_call_operand.vmem [shape: bf16[4,4], index: 5, kind: input, shape index: {}]   ;;  %s2932_s6 = inlined_call_operand.vmem [shape: f32[2,4], index: 6, kind: input, shape index: {}]   ;;  %s2933_s7 = inlined_call_operand.vmem [shape: f32[2,256,4], index: 7, kind: output, shape index: {}]  }
   0x1   :  { %2936 = sst [smem:[#allocation11_spill]] %s2926_s0  ;;  %s2224_s26 = smov 0  }
   0x2   :  { %s2226_s27 = smov 0   ;;  %s2228_s28 = smov 0  }
   0x3   :  { %s2230_s29 = smov 0   ;;  %s2232_s30 = smov 0  }
   0x4 LB: > { %2937 = sst [smem:[#allocation6_spill]] %s2166_s28  ;;  %s29_s8 = sadd.s32 1, %s2162_s27  ;;  %s2174_s30 = sphi %s2232_s30, %s17_s30   ;;  %s2170_s29 = sphi %s2230_s29, %s2947_s29   ;;  %s2166_s28 = sphi %s2228_s28, %s2946_s28   ;;  %s2162_s27 = sphi %s2226_s27, %s2949_s27   ;;  %s2158_s26 = sphi %s2224_s26, %s2944_s26   ;;  %s2154_s25 = sphi %s2222_s25, %s2943_s25   ;;  %s2150_s24 = sphi %s2220_s24, %s2948_s24  }
   0x5   : > { %2938 = sst [smem:[#allocation7_spill]] %s2170_s29  ;;  %p30_p0 = scmp.ge.s32.totalorder %s29_s8, 2 }
   0x6   : > { %s32_s9 = sadd.s32 1, %s2166_s28  ;;  %p1820_p1 = scmp.ge.s32.totalorder %s2174_s30, 1 }
   0x7   : > { %p306_p2 = scmp.lt.s32.totalorder %s2174_s30, 9  ;;  %s2951_s8 = smov (%p30_p0, %s29_s8), 0 }
   0x8   : > { %2939 = sst [smem:[#allocation8_spill]] %s2951_s8  ;;  %s2953_s9 = smov (!%p30_p0, %s32_s9), %s2166_s28 }
   0x9   : > { %p307_p3 = pnand %p1820_p1, %p306_p2  ;;  %p34_p4 = scmp.ge.s32.totalorder %s2953_s9, 2 }
   0xa   : > { %s36_s10 = sadd.s32 1, %s2170_s29  ;;  %s1821_s11 = sshll.u32 (!%p307_p3), %s2154_s25, 4 }
   0xb   : > { %s2955_s9 = smov (%p34_p4, %s2953_s9), 0  ;;  %s2957_s10 = smov (!%p34_p4, %s36_s10), %s2170_s29 }
   0xc   : > { %2940 = sst [smem:[#allocation9_spill]] %s2955_s9  ;;  %p38_p5 = scmp.ge.s32.totalorder %s2957_s10, 2 }
   0xd   : > { %310 = sbr.rel (%p307_p3) target bundleno = 1150 (0x47e), region = 48  ;;  %p368_p6 = scmp.lt.s32.totalorder (!%p307_p3), %s2158_s26, 1 }
   0xe   : > { %s2959_s10 = smov (%p38_p5, %s2957_s10), 0  ;;  %p370_p7 = scmp.lt.s32.totalorder (!%p307_p3), %s1821_s11, 31 }
   0xf   : > { %2941 = sst [smem:[#allocation10_spill]] %s2959_s10  ;;  %p379_p8 = scmp.lt.s32.totalorder (!%p307_p3), %s2150_s24, 1 }
  0x10   : > { %s1826_s15 = sshll.u32 (!%p307_p3), %s2150_s24, 4  ;;  %s2942_s0 = sld [smem:[#allocation11_spill]] (!%p307_p3) }
  0x11   : > { %p388_p9 = scmp.lt.s32.totalorder (!%p307_p3), %s1826_s15, 31  ;;  %p1833_p10 = scmp.ne.s32.totalorder (!%p307_p3), %s2150_s24, 0 }
  0x12   : > { %s2961_s26 = smov (!%p368_p6, %s2158_s26), 1  ;;  %s2963_s11 = smov (!%p370_p7, %s1821_s11), 31 }
  0x13   : > { %s1822_s12 = sshll.u32 %s2961_s26, 5  ;;  %s1824_s13 = sshll.u32 %s2961_s26, 1 }
  0x14   : > { %s373_s14 = sadd.s32 %s1822_s12, %s2963_s11  ;;  %s398_s22 = scalar_lea.vmem %s2929_s3, %s1824_s13 }
  0x15   : > { %s1823_s16 = sshll.u32 %s373_s14, 3  ;;  %s2965_s15 = smov (!%p388_p9, %s1826_s15), 31 }
  0x16   : > { %s2269_s19 = scalar_lea.vmem %s2942_s0, %s1823_s16  ;;  %s2278_s26 = scalar_lea.vmem %s2933_s7, %s1823_s16 }
  0x17   : > { %s380_s23 = scalar_select %p379_p8, %s2150_s24, 1 }
  0x18   : > { %s391_s14 = sadd.s32 %s1822_s12, %s2965_s15  ;;  %413 = sbr.rel (%p1833_p10) target bundleno = 203 (0xcb), region = 52 }
  0x19   : > { %s382_s25 = sadd.s32 %s1824_s13, %s380_s23  ;;  %s1828_s18 = sshll.u32 %s391_s14, 2 }
  0x1a   : > { %s1825_s11 = sshll.u32 %s382_s25, 1  ;;  %s2288_s20 = scalar_lea.vmem %s2928_s2, %s1828_s18 }
  0x1b   : > { %s2283_s17 = scalar_lea.vmem %s2927_s1, %s1825_s11 }
  0x1d   : > { %v473_v0 = vld [vmem:[%s2930_s4] sm:$0x3]  ;;  %vm501_vm0 = vcmask 1041408   ;;  %v415_v3 = vld [vmem:[%s2269_s19 + $0x8] sm:$0xff]  ;;  %vm587_vm1 = vcmask 7168   ;;  %v2176_v7 = vmov -inf  }
  0x1e   : > { %v414_v1 = vld [vmem:[%s2269_s19] sm:$0xff]  ;;  %v503_v2 = vsel %vm501_vm0, %v473_v0, 0  ;;  %588 = vst.msk [vmem:[#allocation3] sm:$0xff] %vm587_vm1, %v2176_v7  ;;  %v419_v9 = vld [vmem:[%s2269_s19 + $0x28] sm:$0xff]  ;;  %vm476_vm2 = vcmask 31744   ;;  %v416_v34 = vld [vmem:[%s2269_s19 + $0x10] sm:$0xff] }
  0x1f   : > { %v430_v4 = vld [vmem:[%s398_s22] sm:$0x3]  ;;  %512 = vmatpush.bf16.msra.mxu0 %v503_v2  ;;  %1941 = vmatpush.bf16.msra.mxu1 %v503_v2  ;;  %589 = vst.msk [vmem:[#allocation3 + $0x8] sm:$0xff] %vm587_vm1, %v2176_v7  ;;  %v423_v11 = vld [vmem:[%s2269_s19 + $0x48] sm:$0xff]  ;;  %v417_v35 = vld [vmem:[%s2269_s19 + $0x18] sm:$0xff]  ;;  %v2177_v50 = vmov 0.0  }
  0x20   : > { %v2296_v5 = vperm.slane %v430_v4, 0  ;;  %v2298_v6 = vperm.slane %v430_v4, 1  ;;  %v418_v8 = vld [vmem:[%s2269_s19 + $0x20] sm:$0xff]  ;;  %1942 = vmatpush.bf16.msra.mxu2 %v503_v2  ;;  %1943 = vmatpush.bf16.msra.mxu3 %v503_v2  ;;  %v427_v13 = vld [vmem:[%s2269_s19 + $0x68] sm:$0xff]  ;;  %590 = vst.msk [vmem:[#allocation3 + $0x10] sm:$0xff] %vm587_vm1, %v2176_v7  ;;  %v420_v36 = vld [vmem:[%s2269_s19 + $0x30] sm:$0xff] }
  0x21   : > { %v422_v10 = vld [vmem:[%s2269_s19 + $0x40] sm:$0xff]  ;;  %591 = vst.msk [vmem:[#allocation3 + $0x18] sm:$0xff] %vm587_vm1, %v2176_v7  ;;  %v421_v37 = vld [vmem:[%s2269_s19 + $0x38] sm:$0xff]  ;;  %v424_v38 = vld [vmem:[%s2269_s19 + $0x50] sm:$0xff]  ;;  %vm570_vm3 = vcmask 27648  }
  0x22   : > { %v426_v12 = vld [vmem:[%s2269_s19 + $0x60] sm:$0xff]  ;;  %v432_v14 = vsub.f32 %v414_v1, %v2296_v5  ;;  %v433_v15 = vsub.f32 %v415_v3, %v2296_v5  ;;  %v436_v16 = vsub.f32 %v418_v8, %v2296_v5  ;;  %v437_v17 = vsub.f32 %v419_v9, %v2296_v5  ;;  %592 = vst.msk [vmem:[#allocation3 + $0x20] sm:$0xff] %vm587_vm1, %v2176_v7  ;;  %v425_v39 = vld [vmem:[%s2269_s19 + $0x58] sm:$0xff]  ;;  %v428_v40 = vld [vmem:[%s2269_s19 + $0x70] sm:$0xff] }
  0x23   : > { %v440_v18 = vsub.f32 %v422_v10, %v2296_v5  ;;  %v441_v19 = vsub.f32 %v423_v11, %v2296_v5  ;;  %v444_v20 = vsub.f32 %v426_v12, %v2296_v5  ;;  %v445_v21 = vsub.f32 %v427_v13, %v2296_v5  ;;  %593 = vst.msk [vmem:[#allocation3 + $0x28] sm:$0xff] %vm587_vm1, %v2176_v7  ;;  %v429_v41 = vld [vmem:[%s2269_s19 + $0x78] sm:$0xff]  ;;  %v2016_v63 = vld [vmem:[%s2932_s6] ss:$0 sm:$0xff] }
  0x24   : > { %v449_v22 = vmul.f32 %v2298_v6, %v432_v14  ;;  %v450_v23 = vmul.f32 %v2298_v6, %v433_v15  ;;  %v453_v24 = vmul.f32 %v2298_v6, %v436_v16  ;;  %v454_v25 = vmul.f32 %v2298_v6, %v437_v17  ;;  %594 = vst.msk [vmem:[#allocation3 + $0x30] sm:$0xff] %vm587_vm1, %v2176_v7 }
  0x25   : > { %v457_v26 = vmul.f32 %v2298_v6, %v440_v18  ;;  %v458_v27 = vmul.f32 %v2298_v6, %v441_v19  ;;  %v461_v28 = vmul.f32 %v2298_v6, %v444_v20  ;;  %v462_v29 = vmul.f32 %v2298_v6, %v445_v21  ;;  %595 = vst.msk [vmem:[#allocation3 + $0x38] sm:$0xff] %vm587_vm1, %v2176_v7 }
  0x26   : > { %v465_v30 = vpack.c.bf16 %v450_v23, %v449_v22  ;;  %v467_v31 = vpack.c.bf16 %v454_v25, %v453_v24  ;;  %596 = vst.msk [vmem:[#allocation3 + $0x40] sm:$0xff] %vm587_vm1, %v2176_v7  ;;  %v434_v42 = vsub.f32 %v416_v34, %v2296_v5  ;;  %v435_v43 = vsub.f32 %v417_v35, %v2296_v5 }
  0x27   : > { %v469_v32 = vpack.c.bf16 %v458_v27, %v457_v26  ;;  %v471_v33 = vpack.c.bf16 %v462_v29, %v461_v28  ;;  %597 = vst.msk [vmem:[#allocation3 + $0x48] sm:$0xff] %vm587_vm1, %v2176_v7  ;;  %v438_v44 = vsub.f32 %v420_v36, %v2296_v5  ;;  %v439_v45 = vsub.f32 %v421_v37, %v2296_v5 }
  0x28   : > { %1834 = vmatmul.msk.bf16.vlgmr.msra.gmra.mxu0 %vm476_vm2, %v465_v30  ;;  %1836 = vmatmul.msk.bf16.vlgmr.msra.gmra.mxu1 %vm476_vm2, %v467_v31  ;;  %598 = vst.msk [vmem:[#allocation3 + $0x50] sm:$0xff] %vm587_vm1, %v2176_v7  ;;  %v442_v46 = vsub.f32 %v424_v38, %v2296_v5  ;;  %v443_v47 = vsub.f32 %v425_v39, %v2296_v5 }
  0x29   : > { %1838 = vmatmul.msk.bf16.vlgmr.msra.gmra.mxu2 %vm476_vm2, %v469_v32  ;;  %1840 = vmatmul.msk.bf16.vlgmr.msra.gmra.mxu3 %vm476_vm2, %v471_v33  ;;  %599 = vst.msk [vmem:[#allocation3 + $0x58] sm:$0xff] %vm587_vm1, %v2176_v7  ;;  %v446_v48 = vsub.f32 %v428_v40, %v2296_v5  ;;  %v447_v49 = vsub.f32 %v429_v41, %v2296_v5 }
  0x2a   : > { %600 = vst.msk [vmem:[#allocation3 + $0x60] sm:$0xff] %vm587_vm1, %v2176_v7  ;;  %v451_v51 = vmul.f32 %v2298_v6, %v434_v42  ;;  %v452_v52 = vmul.f32 %v2298_v6, %v435_v43  ;;  %v455_v53 = vmul.f32 %v2298_v6, %v438_v44  ;;  %v456_v54 = vmul.f32 %v2298_v6, %v439_v45 }
  0x2b   : > { %601 = vst.msk [vmem:[#allocation3 + $0x68] sm:$0xff] %vm587_vm1, %v2176_v7  ;;  %v459_v55 = vmul.f32 %v2298_v6, %v442_v46  ;;  %v460_v56 = vmul.f32 %v2298_v6, %v443_v47  ;;  %v463_v57 = vmul.f32 %v2298_v6, %v446_v48  ;;  %v464_v58 = vmul.f32 %v2298_v6, %v447_v49 }
  0x2c   : > { %602 = vst.msk [vmem:[#allocation3 + $0x70] sm:$0xff] %vm587_vm1, %v2176_v7  ;;  %v466_v59 = vpack.c.bf16 %v452_v52, %v451_v51  ;;  %v468_v60 = vpack.c.bf16 %v456_v54, %v455_v53 }
  0x2d   : > { %603 = vst.msk [vmem:[#allocation3 + $0x78] sm:$0xff] %vm587_vm1, %v2176_v7  ;;  %v470_v61 = vpack.c.bf16 %v460_v56, %v459_v55  ;;  %v472_v62 = vpack.c.bf16 %v464_v58, %v463_v57 }
  0x2e   : > { %604 = vst.msk [vmem:[#allocation4] sm:$0xff] %vm587_vm1, %v2177_v50 }
  0x2f   : > { %605 = vst.msk [vmem:[#allocation4 + $0x8] sm:$0xff] %vm587_vm1, %v2177_v50 }
  0x30   : > { %606 = vst.msk [vmem:[#allocation4 + $0x10] sm:$0xff] %vm587_vm1, %v2177_v50 }
  0x31   : > { %607 = vst.msk [vmem:[#allocation4 + $0x18] sm:$0xff] %vm587_vm1, %v2177_v50 }
  0x32   : > { %608 = vst.msk [vmem:[#allocation4 + $0x20] sm:$0xff] %vm587_vm1, %v2177_v50 }
  0x33   : > { %609 = vst.msk [vmem:[#allocation4 + $0x28] sm:$0xff] %vm587_vm1, %v2177_v50 }
  0x34   : > { %610 = vst.msk [vmem:[#allocation4 + $0x30] sm:$0xff] %vm587_vm1, %v2177_v50 }
  0x35   : > { %611 = vst.msk [vmem:[#allocation4 + $0x38] sm:$0xff] %vm587_vm1, %v2177_v50 }
  0x36   : > { %612 = vst.msk [vmem:[#allocation4 + $0x40] sm:$0xff] %vm587_vm1, %v2177_v50 }
  0x37   : > { %613 = vst.msk [vmem:[#allocation4 + $0x48] sm:$0xff] %vm587_vm1, %v2177_v50 }
  0x38   : > { %1835 = vmatmul.msk.bf16.gmra.mxu0 %vm476_vm2, %v466_v59  ;;  %1837 = vmatmul.msk.bf16.gmra.mxu1 %vm476_vm2, %v468_v60  ;;  %614 = vst.msk [vmem:[#allocation4 + $0x50] sm:$0xff] %vm587_vm1, %v2177_v50 }
  0x39   : > { %1839 = vmatmul.msk.bf16.gmra.mxu2 %vm476_vm2, %v470_v61  ;;  %1841 = vmatmul.msk.bf16.gmra.mxu3 %vm476_vm2, %v472_v62  ;;  %615 = vst.msk [vmem:[#allocation4 + $0x58] sm:$0xff] %vm587_vm1, %v2177_v50 }
  0x3a   : > { %616 = vst.msk [vmem:[#allocation4 + $0x60] sm:$0xff] %vm587_vm1, %v2177_v50 }
  0x3b   : > { %617 = vst.msk [vmem:[#allocation4 + $0x68] sm:$0xff] %vm587_vm1, %v2177_v50 }
  0x3c   : > { %618 = vst.msk [vmem:[#allocation4 + $0x70] sm:$0xff] %vm587_vm1, %v2177_v50 }
  0x3d   : > { %619 = vst.msk [vmem:[#allocation4 + $0x78] sm:$0xff] %vm587_vm1, %v2177_v50 }
  0x3e   : > { %620 = vst.msk [vmem:[#allocation5] sm:$0xff] %vm476_vm2, %v2177_v50 }
  0x3f   : > { %621 = vst.msk [vmem:[#allocation5 + $0x8] sm:$0xff] %vm476_vm2, %v2177_v50 }
  0x40   : > { %622 = vst.msk [vmem:[#allocation5 + $0x10] sm:$0xff] %vm476_vm2, %v2177_v50 }
  0x41   : > { %623 = vst.msk [vmem:[#allocation5 + $0x18] sm:$0xff] %vm476_vm2, %v2177_v50 }
  0x42   : > { %624 = vst.msk [vmem:[#allocation5 + $0x20] sm:$0xff] %vm476_vm2, %v2177_v50 }
  0x43   : > { %625 = vst.msk [vmem:[#allocation5 + $0x28] sm:$0xff] %vm476_vm2, %v2177_v50 }
  0x44   : > { %626 = vst.msk [vmem:[#allocation5 + $0x30] sm:$0xff] %vm476_vm2, %v2177_v50 }
  0x45   : > { %627 = vst.msk [vmem:[#allocation5 + $0x38] sm:$0xff] %vm476_vm2, %v2177_v50 }
  0x46   : > { %628 = vst.msk [vmem:[#allocation5 + $0x40] sm:$0xff] %vm476_vm2, %v2177_v50 }
  0x47   : > { %629 = vst.msk [vmem:[#allocation5 + $0x48] sm:$0xff] %vm476_vm2, %v2177_v50 }
  0x48   : > { %630 = vst.msk [vmem:[#allocation5 + $0x50] sm:$0xff] %vm476_vm2, %v2177_v50 }
  0x49   : > { %631 = vst.msk [vmem:[#allocation5 + $0x58] sm:$0xff] %vm476_vm2, %v2177_v50 }
  0x4a   : > { %632 = vst.msk [vmem:[#allocation5 + $0x60] sm:$0xff] %vm476_vm2, %v2177_v50 }
  0x4b   : > { %633 = vst.msk [vmem:[#allocation5 + $0x68] sm:$0xff] %vm476_vm2, %v2177_v50 }
  0x4c   : > { %634 = vst.msk [vmem:[#allocation5 + $0x70] sm:$0xff] %vm476_vm2, %v2177_v50 }
  0x4d   : > { %635 = vst.msk [vmem:[#allocation5 + $0x78] sm:$0xff] %vm476_vm2, %v2177_v50 }
  0xa5   : > { %v514_v0 = vpop.f32.mrf.mxu0  ;;  %v524_v1 = vpop.f32.mrf.mxu1 }
  0xa6   : > { %v515_v2 = vadd.f32 %v2016_v63, %v514_v0  ;;  %v525_v3 = vadd.f32 %v2016_v63, %v524_v1 }
  0xa8   : > { %v554_v4 = vpack.c.bf16 %v515_v2, %v515_v2  ;;  %v558_v5 = vpack.c.bf16 %v525_v3, %v525_v3 }
  0xaa   : > { %571 = vst.msk [vmem:[#allocation2] sm:$0xf] %vm570_vm3, %v554_v4 }
  0xab   : > { %575 = vst.msk [vmem:[#allocation2 + $0x10] sm:$0xf] %vm570_vm3, %v558_v5 }
  0xac   : > { %v534_v6 = vpop.f32.mrf.mxu2  ;;  %v544_v7 = vpop.f32.mrf.mxu3 }
  0xad   : > { %v535_v8 = vadd.f32 %v2016_v63, %v534_v6  ;;  %v545_v9 = vadd.f32 %v2016_v63, %v544_v7  ;;  %v516_v10 = vpop.f32.mrf.mxu0  ;;  %v526_v11 = vpop.f32.mrf.mxu1 }
  0xae   : > { %v517_v12 = vadd.f32 %v2016_v63, %v516_v10  ;;  %v527_v13 = vadd.f32 %v2016_v63, %v526_v11 }
  0xaf   : > { %v562_v14 = vpack.c.bf16 %v535_v8, %v535_v8  ;;  %v566_v15 = vpack.c.bf16 %v545_v9, %v545_v9 }
  0xb0   : > { %v555_v16 = vpack.c.bf16 %v517_v12, %v517_v12  ;;  %v559_v17 = vpack.c.bf16 %v527_v13, %v527_v13 }
  0xb1   : > { %579 = vst.msk [vmem:[#allocation2 + $0x20] sm:$0xf] %vm570_vm3, %v562_v14 }
  0xb2   : > { %583 = vst.msk [vmem:[#allocation2 + $0x30] sm:$0xf] %vm570_vm3, %v566_v15 }
  0xb3   : > { %572 = vst.msk [vmem:[#allocation2 + $0x4] sm:$0xf] %vm570_vm3, %v555_v16 }
  0xb4   : > { %576 = vst.msk [vmem:[#allocation2 + $0x14] sm:$0xf] %vm570_vm3, %v559_v17  ;;  %v536_v18 = vpop.f32.mrf.mxu2  ;;  %v546_v19 = vpop.f32.mrf.mxu3 }
  0xb5   : > { %v537_v20 = vadd.f32 %v2016_v63, %v536_v18  ;;  %v547_v21 = vadd.f32 %v2016_v63, %v546_v19  ;;  %v519_v22 = vpop.f32.mrf.mxu0  ;;  %v529_v23 = vpop.f32.mrf.mxu1 }
  0xb6   : > { %v520_v24 = vadd.f32 %v2016_v63, %v519_v22  ;;  %v530_v25 = vadd.f32 %v2016_v63, %v529_v23 }
  0xb7   : > { %v563_v26 = vpack.c.bf16 %v537_v20, %v537_v20  ;;  %v567_v27 = vpack.c.bf16 %v547_v21, %v547_v21 }
  0xb8   : > { %v556_v28 = vpack.c.bf16 %v520_v24, %v520_v24  ;;  %v560_v29 = vpack.c.bf16 %v530_v25, %v530_v25 }
  0xb9   : > { %580 = vst.msk [vmem:[#allocation2 + $0x24] sm:$0xf] %vm570_vm3, %v563_v26 }
  0xba   : > { %584 = vst.msk [vmem:[#allocation2 + $0x34] sm:$0xf] %vm570_vm3, %v567_v27 }
  0xbb   : > { %573 = vst.msk [vmem:[#allocation2 + $0x8] sm:$0xf] %vm570_vm3, %v556_v28 }
  0xbc   : > { %577 = vst.msk [vmem:[#allocation2 + $0x18] sm:$0xf] %vm570_vm3, %v560_v29  ;;  %v539_v30 = vpop.f32.mrf.mxu2  ;;  %v549_v31 = vpop.f32.mrf.mxu3 }
  0xbd   : > { %v540_v32 = vadd.f32 %v2016_v63, %v539_v30  ;;  %v550_v33 = vadd.f32 %v2016_v63, %v549_v31  ;;  %v521_v34 = vpop.f32.mrf.mxu0  ;;  %v531_v35 = vpop.f32.mrf.mxu1 }
  0xbe   : > { %v522_v36 = vadd.f32 %v2016_v63, %v521_v34  ;;  %v532_v37 = vadd.f32 %v2016_v63, %v531_v35 }
  0xbf   : > { %v564_v38 = vpack.c.bf16 %v540_v32, %v540_v32  ;;  %v568_v39 = vpack.c.bf16 %v550_v33, %v550_v33 }
  0xc0   : > { %v557_v40 = vpack.c.bf16 %v522_v36, %v522_v36  ;;  %v561_v41 = vpack.c.bf16 %v532_v37, %v532_v37 }
  0xc1   : > { %581 = vst.msk [vmem:[#allocation2 + $0x28] sm:$0xf] %vm570_vm3, %v564_v38 }
  0xc2   : > { %585 = vst.msk [vmem:[#allocation2 + $0x38] sm:$0xf] %vm570_vm3, %v568_v39 }
  0xc3   : > { %574 = vst.msk [vmem:[#allocation2 + $0xc] sm:$0xf] %vm570_vm3, %v557_v40 }
  0xc4   : > { %578 = vst.msk [vmem:[#allocation2 + $0x1c] sm:$0xf] %vm570_vm3, %v561_v41  ;;  %v541_v42 = vpop.f32.mrf.mxu2  ;;  %v551_v43 = vpop.f32.mrf.mxu3 }
  0xc5   : > { %v542_v44 = vadd.f32 %v2016_v63, %v541_v42  ;;  %v552_v45 = vadd.f32 %v2016_v63, %v551_v43 }
  0xc7   : > { %v565_v46 = vpack.c.bf16 %v542_v44, %v542_v44  ;;  %v569_v47 = vpack.c.bf16 %v552_v45, %v552_v45 }
  0xc9   : > { %582 = vst.msk [vmem:[#allocation2 + $0x2c] sm:$0xf] %vm570_vm3, %v565_v46 }
  0xca   : > { %586 = vst.msk [vmem:[#allocation2 + $0x3c] sm:$0xf] %vm570_vm3, %v569_v47 }
  0xcb PF: > { %v652_v48 = vld [vmem:[%s2283_s17] sm:$0x3]  ;;  %vm718_vm4 = vcmask 1041408   ;;  %vm693_vm5 = vcmask 31744   ;;  %v1926_v51 = vld [vmem:[#allocation2 + $0x8] sm:$0xff]  ;;  %v1927_v53 = vld [vmem:[#allocation2 + $0x10] sm:$0xff] }
  0xcc   : > { %v720_v49 = vsel %vm718_vm4, %v652_v48, 0  ;;  %v1925_v50 = vld [vmem:[#allocation2] sm:$0xff]  ;;  %v1931_v54 = vld [vmem:[#allocation2 + $0x30] sm:$0xff]  ;;  %v1928_v55 = vld [vmem:[#allocation2 + $0x18] sm:$0xff]  ;;  %v2178_v10 = vmov 0   ;;  %vm1091_vm6 = vcmask 7168  }
  0xcd   : > { %729 = vmatpush.bf16.msra.mxu0 %v720_v49  ;;  %1944 = vmatpush.bf16.msra.mxu3 %v720_v49  ;;  %v1929_v57 = vld [vmem:[#allocation2 + $0x20] sm:$0xff]  ;;  %v2505_v15 = vld [vmem:[#allocation3 + $0x8] sm:$0xff]  ;;  %v2515_v19 = vld [vmem:[#allocation3 + $0x10] sm:$0xff]  ;;  %p1914_p11 = scmp.ne.s32.totalorder %s2150_s24, 1 }
  0xce   : > { %2017 = vset.pattern.permute.xlu1 %v2178_v10  ;;  %2018 = vset.pattern.permute.xlu2 %v2178_v10  ;;  %v2495_v11 = vld [vmem:[#allocation3] sm:$0xff]  ;;  %v2525_v23 = vld [vmem:[#allocation3 + $0x18] sm:$0xff]  ;;  %v2543_v31 = vld [vmem:[#allocation3 + $0x28] sm:$0xff] }
  0xcf   : > { %2019 = vset.pattern.permute.xlu0 %v2178_v10  ;;  %v2534_v27 = vld [vmem:[#allocation3 + $0x20] sm:$0xff]  ;;  %v2550_v34 = vld [vmem:[#allocation3 + $0x30] sm:$0xff]  ;;  %v2559_v38 = vld [vmem:[#allocation3 + $0x38] sm:$0xff] }
  0xd0   : > { %1874 = vmatmul.msk.bf16.vlgmr.msra.gmra.mxu0 %vm693_vm5, %v1925_v50  ;;  %v1930_v52 = vld [vmem:[#allocation2 + $0x28] sm:$0xff]  ;;  %v2566_v41 = vld [vmem:[#allocation3 + $0x40] sm:$0xff]  ;;  %v2568_v42 = vld [vmem:[#allocation3 + $0x50] sm:$0xff] }
  0xd1   : > { %1879 = vmatmul.msk.bf16.vlgmr.msra.gmra.mxu3 %vm693_vm5, %v1930_v52  ;;  %v1932_v56 = vld [vmem:[#allocation2 + $0x38] sm:$0xff]  ;;  %v2582_v48 = vld [vmem:[#allocation3 + $0x48] sm:$0xff] }
  0xd2   : > { %v1940_v47 = vld [vmem:[%s2288_s20 + $0x38] sm:$0xff]  ;;  %v2586_v50 = vld [vmem:[#allocation3 + $0x68] sm:$0xff] }
  0xd3   : > { %1292 = vmatpush.bf16.msra.mxu1 %v1940_v47  ;;  %1945 = vmatpush.bf16.msra.mxu2 %v1940_v47  ;;  %v2584_v49 = vld [vmem:[#allocation3 + $0x58] sm:$0xff]  ;;  %v1938_v10 = vld [vmem:[%s2288_s20 + $0x28] sm:$0xff] }
  0xd4   : > { %v2630_v47 = vld [vmem:[#allocation3 + $0x78] sm:$0xff] }
  0xe0   : > { %1875 = vmatmul.msk.bf16.gmra.mxu0 %vm693_vm5, %v1926_v51  ;;  %v1939_v51 = vld [vmem:[%s2288_s20 + $0x30] sm:$0xff] }
  0xe1   : > { %1880 = vmatmul.msk.bf16.gmra.mxu3 %vm693_vm5, %v1931_v54  ;;  %1293 = vmatpush.bf16.msra.mxu1 %v1939_v51 }
  0xe2   : > { %1946 = vmatpush.bf16.msra.mxu2 %v1939_v51  ;;  %v1935_v51 = vld [vmem:[%s2288_s20 + $0x10] sm:$0xff] }
  0xe5   : > { %1294 = vmatpush.bf16.msra.mxu1 %v1938_v10 }
  0xe6   : > { %1947 = vmatpush.bf16.msra.mxu2 %v1938_v10  ;;  %v1934_v10 = vld [vmem:[%s2288_s20 + $0x8] sm:$0xff] }
  0xf0   : > { %1876 = vmatmul.msk.bf16.gmra.mxu0 %vm693_vm5, %v1927_v53 }
  0xf1   : > { %1881 = vmatmul.msk.bf16.gmra.mxu3 %vm693_vm5, %v1932_v56 }
 0x100   : > { %1877 = vmatmul.msk.bf16.gmra.mxu0 %vm693_vm5, %v1928_v55 }
 0x110   : > { %1878 = vmatmul.msk.bf16.gmra.mxu0 %vm693_vm5, %v1929_v57 }
 0x14d   : > { %v2447_v58 = vpop.f32.mrf.mxu0 }
 0x14e   : > { %787 = vmax.xlane.f32.xlu0 %v2447_v58 }
 0x154   : > { %v2462_v63 = vpop.f32.mrf.mxu3 }
 0x155   : > { %v2450_v59 = vpop.f32.mrf.mxu0 }
 0x156   : > { %789 = vmax.xlane.f32.xlu0 %v2450_v59 }
 0x15c   : > { %v2467_v1 = vpop.f32.mrf.mxu3 }
 0x15d   : > { %v2453_v60 = vpop.f32.mrf.mxu0 }
 0x15e   : > { %791 = vmax.xlane.f32.xlu1 %v2453_v60 }
 0x164   : > { %v2474_v4 = vpop.f32.mrf.mxu3 }
 0x165   : > { %v2456_v61 = vpop.f32.mrf.mxu0 }
 0x166   : > { %793 = vmax.xlane.f32.xlu1 %v2456_v61 }
 0x16c   : > { %v2481_v6 = vpop.f32.mrf.mxu3 }
 0x16d   : > { %v2459_v62 = vpop.f32.mrf.mxu0 }
 0x16e   : > { %795 = vmax.xlane.f32.xlu2 %v2459_v62 }
 0x174   : > { %v2488_v8 = vpop.f32.mrf.mxu3 }
 0x175   : > { %v2464_v0 = vpop.f32.mrf.mxu0 }
 0x176   : > { %797 = vmax.xlane.f32.xlu2 %v2464_v0 }
 0x17c   : > { %v2492_v9 = vpop.f32.mrf.mxu3 }
 0x17d   : > { %v2469_v2 = vpop.f32.mrf.mxu0 }
 0x17e   : > { %799 = vmax.xlane.f32.xlu0 %v2469_v2 }
 0x185   : > { %v2472_v3 = vpop.f32.mrf.mxu0 }
 0x186   : > { %801 = vmax.xlane.f32.xlu1 %v2472_v3 }
 0x18d   : > { %v2477_v5 = vpop.f32.mrf.mxu0 }
 0x18e   : > { %803 = vmax.xlane.f32.xlu2 %v2477_v5  ;;  %807 = vmax.xlane.f32.xlu1 %v2462_v63 }
 0x195   : > { %v2483_v7 = vpop.f32.mrf.mxu0 }
 0x196   : > { %805 = vmax.xlane.f32.xlu0 %v2483_v7  ;;  %809 = vmax.xlane.f32.xlu2 %v2467_v1 }
 0x197   : > { %813 = vmax.xlane.f32.xlu1 %v2481_v6 }
 0x19e   : > { %811 = vmax.xlane.f32.xlu0 %v2474_v4  ;;  %815 = vmax.xlane.f32.xlu2 %v2488_v8 }
 0x1a6   : > { %817 = vmax.xlane.f32.xlu0 %v2492_v9 }
 0x1c1   : > { %v788_v12 = vpop.xlane.xlu0 %787 }
 0x1c2   : > { %v2498_v13 = vmax.f32 %v2495_v11, %v788_v12 }
 0x1c4   : > { %v835_v14 = vsub.f32 %v2495_v11, %v2498_v13  ;;  %1373 = vst.msk [vmem:[#allocation3] sm:$0xff] %vm1091_vm6, %v2498_v13  ;;  %885 = vperm.xlu1 %2017, %v2498_v13  }
 0x1c9   : > { %v790_v16 = vpop.xlane.xlu0 %789 }
 0x1ca   : > { %v2508_v17 = vmax.f32 %v2505_v15, %v790_v16  ;;  %v1937_v16 = vld [vmem:[%s2288_s20 + $0x20] sm:$0xff] }
 0x1cb   : > { %1295 = vmatpush.bf16.msra.mxu1 %v1937_v16  ;;  %1948 = vmatpush.bf16.msra.mxu2 %v1937_v16  ;;  %v1933_v16 = vld [vmem:[%s2288_s20] sm:$0xff] }
 0x1cc   : > { %v836_v18 = vsub.f32 %v2505_v15, %v2508_v17  ;;  %1374 = vst.msk [vmem:[#allocation3 + $0x8] sm:$0xff] %vm1091_vm6, %v2508_v17  ;;  %890 = vperm.xlu2 %2018, %v2508_v17   ;;  %v851_v15 = vmul.f32 1.442695, %v835_v14 }
 0x1d1   : > { %v792_v20 = vpop.xlane.xlu1 %791 }
 0x1d2   : > { %v2518_v21 = vmax.f32 %v2515_v19, %v792_v20  ;;  %v2610_v20 = vld [vmem:[#allocation3 + $0x60] sm:$0xff] }
 0x1d4   : > { %v837_v22 = vsub.f32 %v2515_v19, %v2518_v21  ;;  %1375 = vst.msk [vmem:[#allocation3 + $0x10] sm:$0xff] %vm1091_vm6, %v2518_v21  ;;  %895 = vperm.xlu0 %2019, %v2518_v21  }
 0x1d9   : > { %v794_v24 = vpop.xlane.xlu1 %793 }
 0x1da   : > { %v2528_v25 = vmax.f32 %v2525_v23, %v794_v24  ;;  %v2612_v24 = vld [vmem:[#allocation3 + $0x70] sm:$0xff] }
 0x1dc   : > { %v838_v26 = vsub.f32 %v2525_v23, %v2528_v25  ;;  %1376 = vst.msk [vmem:[#allocation3 + $0x18] sm:$0xff] %vm1091_vm6, %v2528_v25 }
 0x1de   : > { %v857_v14 = vmul.f32 1.442695, %v838_v26 }
 0x1e1   : > { %v796_v28 = vpop.xlane.xlu2 %795 }
 0x1e2   : > { %v2537_v29 = vmax.f32 %v2534_v27, %v796_v28 }
 0x1e4   : > { %v839_v30 = vsub.f32 %v2534_v27, %v2537_v29  ;;  %1377 = vst.msk [vmem:[#allocation3 + $0x20] sm:$0xff] %vm1091_vm6, %v2537_v29 }
 0x1e9   : > { %v798_v32 = vpop.xlane.xlu2 %797 }
 0x1ea   : > { %v2546_v33 = vmax.f32 %v2543_v31, %v798_v32 }
 0x1ec   : > { %1378 = vst.msk [vmem:[#allocation3 + $0x28] sm:$0xff] %vm1091_vm6, %v2546_v33 }
 0x1f1   : > { %v800_v35 = vpop.xlane.xlu0 %799 }
 0x1f2   : > { %v2553_v36 = vmax.f32 %v2550_v34, %v800_v35 }
 0x1f4   : > { %v841_v37 = vsub.f32 %v2550_v34, %v2553_v36  ;;  %1379 = vst.msk [vmem:[#allocation3 + $0x30] sm:$0xff] %vm1091_vm6, %v2553_v36 }
 0x1f9   : > { %v802_v39 = vpop.xlane.xlu1 %801 }
 0x1fa   : > { %v2562_v40 = vmax.f32 %v2559_v38, %v802_v39 }
 0x1fc   : > { %1380 = vst.msk [vmem:[#allocation3 + $0x38] sm:$0xff] %vm1091_vm6, %v2562_v40  ;;  %v842_v11 = vsub.f32 %v2559_v38, %v2562_v40 }
 0x201   : > { %v804_v43 = vpop.xlane.xlu2 %803  ;;  %v808_v44 = vpop.xlane.xlu1 %807 }
 0x202   : > { %v2571_v45 = vmax.f32 %v2566_v41, %v804_v43  ;;  %v2574_v46 = vmax.f32 %v2568_v42, %v808_v44  ;;  %v1936_v44 = vld [vmem:[%s2288_s20 + $0x18] sm:$0xff] }
 0x203   : > { %1296 = vmatpush.bf16.msra.mxu1 %v1936_v44  ;;  %1949 = vmatpush.bf16.msra.mxu2 %v1936_v44  ;;  %v840_v44 = vsub.f32 %v2543_v31, %v2546_v33 }
 0x204   : > { %1381 = vst.msk [vmem:[#allocation3 + $0x40] sm:$0xff] %vm1091_vm6, %v2571_v45  ;;  %925 = vperm.xlu2 %2018, %v2571_v45   ;;  %v843_v38 = vsub.f32 %v2566_v41, %v2571_v45  ;;  %v845_v23 = vsub.f32 %v2568_v42, %v2574_v46 }
 0x205   : > { %1383 = vst.msk [vmem:[#allocation3 + $0x50] sm:$0xff] %vm1091_vm6, %v2574_v46  ;;  %v861_v17 = vmul.f32 1.442695, %v840_v44 }
 0x206   : > { %v871_v41 = vmul.f32 1.442695, %v845_v23 }
 0x207   : > { %1297 = vmatpush.bf16.msra.mxu1 %v1935_v51  ;;  %1950 = vmatpush.bf16.msra.mxu2 %v1935_v51 }
 0x209   : > { %v806_v52 = vpop.xlane.xlu0 %805  ;;  %v810_v53 = vpop.xlane.xlu2 %809 }
 0x20a   : > { %v2590_v54 = vmax.f32 %v2582_v48, %v806_v52  ;;  %v2593_v55 = vmax.f32 %v2584_v49, %v810_v53  ;;  %v814_v56 = vpop.xlane.xlu1 %813 }
 0x20b   : > { %v2596_v57 = vmax.f32 %v2586_v50, %v814_v56  ;;  %1298 = vmatpush.bf16.msra.mxu1 %v1934_v10  ;;  %1951 = vmatpush.bf16.msra.mxu2 %v1934_v10 }
 0x20c   : > { %1382 = vst.msk [vmem:[#allocation3 + $0x48] sm:$0xff] %vm1091_vm6, %v2590_v54  ;;  %900 = vperm.xlu2 %2018, %v2528_v25   ;;  %930 = vperm.xlu1 %2017, %v2590_v54  }
 0x20d   : > { %1384 = vst.msk [vmem:[#allocation3 + $0x58] sm:$0xff] %vm1091_vm6, %v2593_v55  ;;  %v848_v12 = vsub.f32 %v2586_v50, %v2596_v57 }
 0x20e   : > { %1386 = vst.msk [vmem:[#allocation3 + $0x68] sm:$0xff] %vm1091_vm6, %v2596_v57 }
 0x20f   : > { %1299 = vmatpush.bf16.msra.mxu1 %v1933_v16  ;;  %1952 = vmatpush.bf16.msra.mxu2 %v1933_v16 }
 0x211   : > { %v812_v28 = vpop.xlane.xlu0 %811  ;;  %v816_v32 = vpop.xlane.xlu2 %815 }
 0x212   : > { %v2615_v35 = vmax.f32 %v2610_v20, %v812_v28  ;;  %v2618_v39 = vmax.f32 %v2612_v24, %v816_v32  ;;  %v853_v28 = vmul.f32 1.442695, %v836_v18  ;;  %v855_v32 = vmul.f32 1.442695, %v837_v22 }
 0x213   : > { %v859_v18 = vmul.f32 1.442695, %v839_v30  ;;  %v846_v22 = vsub.f32 %v2584_v49, %v2593_v55  ;;  %v865_v30 = vmul.f32 1.442695, %v842_v11 }
 0x214   : > { %1385 = vst.msk [vmem:[#allocation3 + $0x60] sm:$0xff] %vm1091_vm6, %v2615_v35  ;;  %940 = vperm.xlu2 %2018, %v2593_v55   ;;  %935 = vperm.xlu1 %2017, %v2574_v46   ;;  %v849_v43 = vsub.f32 %v2612_v24, %v2618_v39  ;;  %2020 = vpow2.f32 %v853_v28  ;;  %v867_v55 = vmul.f32 1.442695, %v843_v38 }
 0x215   : > { %945 = vperm.xlu0 %2019, %v2615_v35   ;;  %1387 = vst.msk [vmem:[#allocation3 + $0x70] sm:$0xff] %vm1091_vm6, %v2618_v39  ;;  %2022 = vpow2.f32 %v855_v32  ;;  %v873_v27 = vmul.f32 1.442695, %v846_v22 }
 0x216   : > { %2024 = vpow2.f32 %v851_v15 }
 0x217   : > { %2026 = vpow2.f32 %v861_v17 }
 0x218   : > { %2028 = vpow2.f32 %v859_v18 }
 0x219   : > { %v818_v52 = vpop.xlane.xlu0 %817  ;;  %2030 = vpow2.f32 %v857_v14 }
 0x21a   : > { %v2634_v53 = vmax.f32 %v2630_v47, %v818_v52  ;;  %v2662_v19 = vpop.eup %2020  ;;  %2032 = vpow2.f32 %v873_v27 }
 0x21b   : > { %v2664_v21 = vpop.eup %2022  ;;  %2034 = vpow2.f32 %v865_v30 }
 0x21c   : > { %950 = vperm.xlu2 %2018, %v2596_v57   ;;  %905 = vperm.xlu1 %2017, %v2537_v29   ;;  %v850_v56 = vsub.f32 %v2630_v47, %v2634_v53  ;;  %1388 = vst.msk [vmem:[#allocation3 + $0x78] sm:$0xff] %vm1091_vm6, %v2634_v53  ;;  %v2676_v29 = vpop.eup %2024  ;;  %v1109_v57 = vld [vmem:[#allocation5 + $0x8] sm:$0xff] }
 0x21d   : > { %955 = vperm.xlu0 %2019, %v2618_v39  }
 0x224   : > { %910 = vperm.xlu1 %2017, %v2546_v33   ;;  %960 = vperm.xlu2 %2018, %v2634_v53   ;;  %v2679_v33 = vpop.eup %2026 }
 0x225   : > { %920 = vperm.xlu0 %2019, %v2562_v40   ;;  %v2681_v49 = vpop.eup %2028  ;;  %v863_v40 = vmul.f32 1.442695, %v841_v37 }
 0x226   : > { %v891_v13 = vpop.permute.xlu2 %890  ;;  %v2694_v52 = vpop.eup %2030 }
 0x227   : > { %v964_v31 = vsub.f32 %v2450_v59, %v891_v13  ;;  %v2696_v45 = vpop.eup %2032 }
 0x228   : > { %v2698_v10 = vpop.eup %2034 }
 0x229   : > { %v981_v59 = vmul.f32 1.442695, %v964_v31 }
 0x22b   : > { %2036 = vpow2.f32 %v981_v59 }
 0x22c   : > { %915 = vperm.xlu1 %2017, %v2553_v36   ;;  %1131 = vperm.xlu2 %2018, %v2662_v19  }
 0x22d   : > { %1136 = vperm.xlu0 %2019, %v2664_v21  }
 0x231   : > { %v2705_v34 = vpop.eup %2036 }
 0x234   : > { %1126 = vperm.xlu1 %2017, %v2676_v29   ;;  %1151 = vperm.xlu2 %2018, %v2679_v33  }
 0x235   : > { %1146 = vperm.xlu0 %2019, %v2681_v49  }
 0x236   : > { %v886_v25 = vpop.permute.xlu1 %885 }
 0x237   : > { %v963_v26 = vsub.f32 %v2447_v58, %v886_v25  ;;  %v847_v58 = vsub.f32 %v2610_v20, %v2615_v35  ;;  %v844_v20 = vsub.f32 %v2582_v48, %v2590_v54 }
 0x239   : > { %v979_v51 = vmul.f32 1.442695, %v963_v26  ;;  %v875_v37 = vmul.f32 1.442695, %v847_v58  ;;  %v869_v35 = vmul.f32 1.442695, %v844_v20 }
 0x23b   : > { %2038 = vpow2.f32 %v979_v51 }
 0x23c   : > { %2040 = vpow2.f32 %v863_v40  ;;  %1141 = vperm.xlu1 %2017, %v2694_v52   ;;  %1181 = vperm.xlu2 %2018, %v2696_v45  }
 0x23d   : > { %2042 = vpow2.f32 %v867_v55  ;;  %1161 = vperm.xlu0 %2019, %v2698_v10  }
 0x23e   : > { %2044 = vpow2.f32 %v871_v41 }
 0x23f   : > { %2046 = vpow2.f32 %v875_v37 }
 0x240   : > { %2048 = vpow2.f32 %v869_v35 }
 0x241   : > { %v2039_v36 = vpop.eup %2038 }
 0x242   : > { %v2707_v42 = vpop.eup %2040  ;;  %v1220_v46 = vpack.c.bf16 %v2705_v34, %v2039_v36 }
 0x243   : > { %v2710_v16 = vpop.eup %2042 }
 0x244   : > { %v2712_v28 = vpop.eup %2044  ;;  %1300 = vmatmul.bf16.vlgmr.msra.gmra.mxu1 %v1220_v46  ;;  %1156 = vperm.xlu1 %2017, %v2707_v42  }
 0x245   : > { %1176 = vperm.xlu0 %2019, %v2712_v28   ;;  %1166 = vperm.xlu2 %2018, %v2710_v16   ;;  %v2719_v32 = vpop.eup %2046 }
 0x246   : > { %v2722_v44 = vpop.eup %2048  ;;  %v896_v15 = vpop.permute.xlu0 %895 }
 0x247   : > { %v965_v18 = vsub.f32 %v2453_v60, %v896_v15 }
 0x249   : > { %v983_v48 = vmul.f32 1.442695, %v965_v18 }
 0x24b   : > { %2050 = vpow2.f32 %v983_v48 }
 0x24c   : > { %1186 = vperm.xlu1 %2017, %v2719_v32  }
 0x251   : > { %v2051_v13 = vpop.eup %2050 }
 0x254   : > { %1171 = vperm.xlu1 %2017, %v2722_v44  }
 0x25e   : > { %v926_v17 = vpop.permute.xlu2 %925 }
 0x25f   : > { %v971_v60 = vsub.f32 %v2477_v5, %v926_v17 }
 0x261   : > { %v995_v59 = vmul.f32 1.442695, %v971_v60 }
 0x266   : > { %v901_v54 = vpop.permute.xlu2 %900 }
 0x267   : > { %v966_v22 = vsub.f32 %v2456_v61, %v901_v54 }
 0x269   : > { %v985_v11 = vmul.f32 1.442695, %v966_v22 }
 0x26b   : > { %2052 = vpow2.f32 %v985_v11 }
 0x26e   : > { %1043 = vadd.xlane.f32.xlu2 %v2039_v36  ;;  %v941_v14 = vpop.permute.xlu2 %940 }
 0x26f   : > { %v974_v27 = vsub.f32 %v2467_v1, %v941_v14  ;;  %1047 = vadd.xlane.f32.xlu0 %v2051_v13 }
 0x271   : > { %v2053_v30 = vpop.eup %2052  ;;  %v1001_v31 = vmul.f32 1.442695, %v974_v27 }
 0x272   : > { %v1221_v38 = vpack.c.bf16 %v2053_v30, %v2051_v13 }
 0x273   : > { %2054 = vpow2.f32 %v1001_v31 }
 0x274   : > { %1305 = vmatmul.bf16.gmra.mxu1 %v1221_v38  ;;  %2056 = vpow2.f32 %v995_v59 }
 0x276   : > { %v951_v61 = vpop.permute.xlu2 %950 }
 0x277   : > { %v976_v48 = vsub.f32 %v2481_v6, %v951_v61 }
 0x279   : > { %v2055_v23 = vpop.eup %2054 }
 0x27a   : > { %1065 = vadd.xlane.f32.xlu2 %v2055_v23  ;;  %v2057_v41 = vpop.eup %2056 }
 0x27e   : > { %v931_v25 = vpop.permute.xlu1 %930  ;;  %v961_v58 = vpop.permute.xlu2 %960 }
 0x27f   : > { %v972_v26 = vsub.f32 %v2483_v7, %v931_v25  ;;  %v978_v35 = vsub.f32 %v2492_v9, %v961_v58  ;;  %v1005_v9 = vmul.f32 1.442695, %v976_v48  ;;  %v1013_v48 = vld [vmem:[#allocation4 + $0x10] sm:$0xff] }
 0x281   : > { %v997_v40 = vmul.f32 1.442695, %v972_v26  ;;  %v1009_v15 = vmul.f32 1.442695, %v978_v35 }
 0x282   : > { %1049 = vadd.xlane.f32.xlu2 %v2053_v30 }
 0x283   : > { %2058 = vpow2.f32 %v997_v40 }
 0x286   : > { %v936_v1 = vpop.permute.xlu1 %935  ;;  %v1132_v58 = vpop.permute.xlu2 %1131 }
 0x287   : > { %v973_v55 = vsub.f32 %v2462_v63, %v936_v1  ;;  %v946_v51 = vpop.permute.xlu0 %945  ;;  %v1205_v47 = vmul.f32 %v1132_v58, %v1109_v57 }
 0x288   : > { %v975_v36 = vsub.f32 %v2474_v4, %v946_v51  ;;  %v877_v51 = vmul.f32 1.442695, %v848_v12 }
 0x289   : > { %v2059_v37 = vpop.eup %2058  ;;  %v999_v5 = vmul.f32 1.442695, %v973_v55 }
 0x28a   : > { %v1003_v46 = vmul.f32 1.442695, %v975_v36  ;;  %v1224_v20 = vpack.c.bf16 %v2059_v37, %v2057_v41 }
 0x28b   : > { %2060 = vpow2.f32 %v999_v5 }
 0x28c   : > { %2062 = vpow2.f32 %v1003_v46  ;;  %1320 = vmatmul.bf16.vlgmr.msra.gmra.mxu2 %v1224_v20 }
 0x28d   : > { %2064 = vpow2.f32 %v1009_v15 }
 0x28e   : > { %v906_v7 = vpop.permute.xlu1 %905  ;;  %v2755_v12 = vpop.permute.xlu2 %1151 }
 0x28f   : > { %v956_v17 = vpop.permute.xlu0 %955  ;;  %v967_v4 = vsub.f32 %v2459_v62, %v906_v7 }
 0x290   : > { %v977_v18 = vsub.f32 %v2488_v8, %v956_v17 }
 0x291   : > { %v2061_v63 = vpop.eup %2060  ;;  %v987_v11 = vmul.f32 1.442695, %v967_v4 }
 0x292   : > { %v2063_v54 = vpop.eup %2062  ;;  %v1007_v22 = vmul.f32 1.442695, %v977_v18  ;;  %1063 = vadd.xlane.f32.xlu1 %v2061_v63  ;;  %v1225_v6 = vpack.c.bf16 %v2055_v23, %v2061_v63  ;;  %v1011_v63 = vld [vmem:[#allocation4] sm:$0xff] }
 0x293   : > { %1067 = vadd.xlane.f32.xlu0 %v2063_v54  ;;  %v2065_v27 = vpop.eup %2064  ;;  %v1027_v4 = vmul.f32 %v2676_v29, %v1011_v63 }
 0x294   : > { %2066 = vpow2.f32 %v1007_v22 }
 0x295   : > { %2068 = vpow2.f32 %v1005_v9  ;;  %v1029_v9 = vmul.f32 %v2664_v21, %v1013_v48  ;;  %v1014_v21 = vld [vmem:[#allocation4 + $0x18] sm:$0xff] }
 0x296   : > { %v911_v13 = vpop.permute.xlu1 %910  ;;  %2070 = vpow2.f32 %v987_v11  ;;  %v2761_v7 = vpop.permute.xlu2 %1181 }
 0x297   : > { %v968_v14 = vsub.f32 %v2464_v0, %v911_v13  ;;  %v921_v59 = vpop.permute.xlu0 %920 }
 0x298   : > { %v970_v26 = vsub.f32 %v2472_v3, %v921_v59  ;;  %v879_v3 = vmul.f32 1.442695, %v849_v43 }
 0x299   : > { %v989_v30 = vmul.f32 1.442695, %v968_v14 }
 0x29a   : > { %v2067_v8 = vpop.eup %2066  ;;  %1045 = vadd.xlane.f32.xlu1 %v2705_v34  ;;  %v993_v34 = vmul.f32 1.442695, %v970_v26 }
 0x29b   : > { %2072 = vpow2.f32 %v989_v30  ;;  %1073 = vadd.xlane.f32.xlu0 %v2065_v27  ;;  %1071 = vadd.xlane.f32.xlu2 %v2067_v8  ;;  %v2069_v31 = vpop.eup %2068  ;;  %v1227_v55 = vpack.c.bf16 %v2065_v27, %v2067_v8  ;;  %v1022_v30 = vld [vmem:[#allocation4 + $0x58] sm:$0xff] }
 0x29c   : > { %1325 = vmatmul.bf16.gmra.mxu2 %v1225_v6  ;;  %v2071_v60 = vpop.eup %2070  ;;  %v1226_v40 = vpack.c.bf16 %v2069_v31, %v2063_v54  ;;  %v1038_v8 = vmul.f32 %v2696_v45, %v1022_v30  ;;  %v1110_v6 = vld [vmem:[#allocation5 + $0x10] sm:$0xff] }
 0x29e   : > { %v916_v62 = vpop.permute.xlu1 %915 }
 0x29f   : > { %v969_v38 = vsub.f32 %v2469_v2, %v916_v62  ;;  %v1137_v36 = vpop.permute.xlu0 %1136  ;;  %v1167_v17 = vpop.permute.xlu2 %1166 }
 0x2a1   : > { %v2073_v61 = vpop.eup %2072  ;;  %v991_v0 = vmul.f32 1.442695, %v969_v38  ;;  %v1206_v38 = vmul.f32 %v1137_v36, %v1110_v6 }
 0x2a2   : > { %1069 = vadd.xlane.f32.xlu1 %v2069_v31  ;;  %v1222_v25 = vpack.c.bf16 %v2073_v61, %v2071_v60 }
 0x2a3   : > { %2074 = vpow2.f32 %v991_v0  ;;  %1053 = vadd.xlane.f32.xlu2 %v2073_v61  ;;  %v1030_v61 = vmul.f32 %v2694_v52, %v1014_v21  ;;  %v1111_v0 = vld [vmem:[#allocation5 + $0x18] sm:$0xff]  ;;  %v1112_v21 = vld [vmem:[#allocation5 + $0x20] sm:$0xff] }
 0x2a4   : > { %1310 = vmatmul.bf16.gmra.mxu1 %v1222_v25  ;;  %2076 = vpow2.f32 %v993_v34 }
 0x2a5   : > { %2078 = vpow2.f32 %v879_v3 }
 0x2a6   : > { %v1127_v5 = vpop.permute.xlu1 %1126  ;;  %2080 = vpow2.f32 %v877_v51 }
 0x2a7   : > { %v2757_v43 = vpop.permute.xlu0 %1146 }
 0x2a9   : > { %v2075_v23 = vpop.eup %2074 }
 0x2aa   : > { %1051 = vadd.xlane.f32.xlu1 %v2071_v60  ;;  %1055 = vadd.xlane.f32.xlu0 %v2075_v23  ;;  %v2077_v2 = vpop.eup %2076 }
 0x2ab   : > { %1059 = vadd.xlane.f32.xlu2 %v2057_v41  ;;  %v1223_v1 = vpack.c.bf16 %v2077_v2, %v2075_v23  ;;  %v1108_v41 = vld [vmem:[#allocation5] sm:$0xff]  ;;  %v2749_v24 = vpop.eup %2078 }
 0x2ac   : > { %1330 = vmatmul.bf16.gmra.mxu2 %v1226_v40  ;;  %v1204_v46 = vmul.f32 %v1127_v5, %v1108_v41  ;;  %v2753_v50 = vpop.eup %2080  ;;  %v1012_v41 = vld [vmem:[#allocation4 + $0x8] sm:$0xff]  ;;  %v1025_v5 = vld [vmem:[#allocation4 + $0x70] sm:$0xff] }
 0x2ad   : > { %v1041_v57 = vmul.f32 %v2749_v24, %v1025_v5 }
 0x2ae   : > { %v1142_v54 = vpop.permute.xlu1 %1141 }
 0x2af   : > { %v2763_v15 = vpop.permute.xlu0 %1161  ;;  %v1207_v34 = vmul.f32 %v1142_v54, %v1111_v0 }
 0x2b2   : > { %1061 = vadd.xlane.f32.xlu0 %v2059_v37  ;;  %1057 = vadd.xlane.f32.xlu1 %v2077_v2  ;;  %v881_v37 = vmul.f32 1.442695, %v850_v56  ;;  %v1021_v2 = vld [vmem:[#allocation4 + $0x50] sm:$0xff] }
 0x2b3   : > { %v1037_v3 = vmul.f32 %v2712_v28, %v1021_v2  ;;  %v1208_v2 = vmul.f32 %v2757_v43, %v1112_v21 }
 0x2b4   : > { %1315 = vmatmul.bf16.gmra.mxu1 %v1223_v1  ;;  %2082 = vpow2.f32 %v881_v37  ;;  %v1023_v1 = vld [vmem:[#allocation4 + $0x60] sm:$0xff]  ;;  %v1026_v37 = vld [vmem:[#allocation4 + $0x78] sm:$0xff] }
 0x2b5   : > { %v1039_v51 = vmul.f32 %v2719_v32, %v1023_v1 }
 0x2b6   : > { %v2771_v27 = vpop.permute.xlu1 %1156 }
 0x2b7   : > { %v2765_v18 = vpop.permute.xlu0 %1176 }
 0x2ba   : > { %v2083_v56 = vpop.eup %2082 }
 0x2bb   : > { %v1042_v28 = vmul.f32 %v2083_v56, %v1026_v37 }
 0x2bc   : > { %1335 = vmatmul.bf16.gmra.mxu2 %v1227_v55 }
 0x2be   : > { %v2775_v59 = vpop.permute.xlu1 %1186 }
 0x2c1   : > { %v1301_v20 = vpop.f32.mrf.mxu1 }
 0x2c2   : > { %v1341_v39 = vadd.f32 %v1301_v20, %v1204_v46  ;;  %v1116_v46 = vld [vmem:[#allocation5 + $0x40] sm:$0xff]  ;;  %v1028_v20 = vmul.f32 %v2662_v19, %v1012_v41  ;;  %v1016_v19 = vld [vmem:[#allocation4 + $0x28] sm:$0xff] }
 0x2c3   : > { %1196 = vperm.xlu2 %2018, %v2749_v24  }
 0x2c4   : > { %1357 = vst.msk [vmem:[#allocation5] sm:$0xff] %vm693_vm5, %v1341_v39 }
 0x2c6   : > { %1191 = vperm.xlu0 %2019, %v2753_v50   ;;  %v1172_v40 = vpop.permute.xlu1 %1171 }
 0x2c9   : > { %v1303_v53 = vpop.f32.mrf.mxu1 }
 0x2ca   : > { %v1342_v35 = vadd.f32 %v1303_v53, %v1205_v47  ;;  %v1212_v47 = vmul.f32 %v1167_v17, %v1116_v46  ;;  %v1032_v17 = vmul.f32 %v2679_v33, %v1016_v19 }
 0x2cb   : > { %1201 = vperm.xlu1 %2017, %v2083_v56  }
 0x2cc   : > { %1358 = vst.msk [vmem:[#allocation5 + $0x8] sm:$0xff] %vm693_vm5, %v1342_v35 }
 0x2e1   : > { %v1044_v22 = vpop.xlane.xlu2 %1043 }
 0x2e2   : > { %v1075_v11 = vadd.f32 %v1044_v22, %v1027_v4  ;;  %v1048_v13 = vpop.xlane.xlu0 %1047  ;;  %v1024_v22 = vld [vmem:[#allocation4 + $0x68] sm:$0xff] }
 0x2e3   : > { %v1077_v14 = vadd.f32 %v1048_v13, %v1029_v9  ;;  %v1117_v9 = vld [vmem:[#allocation5 + $0x48] sm:$0xff]  ;;  %v1040_v24 = vmul.f32 %v2753_v50, %v1024_v22 }
 0x2e4   : > { %1092 = vst.msk [vmem:[#allocation4] sm:$0xff] %vm1091_vm6, %v1075_v11  ;;  %v1213_v11 = vmul.f32 %v1172_v40, %v1117_v9 }
 0x2e5   : > { %1094 = vst.msk [vmem:[#allocation4 + $0x10] sm:$0xff] %vm1091_vm6, %v1077_v14 }
 0x2ed   : > { %v1066_v62 = vpop.xlane.xlu2 %1065 }
 0x2ee   : > { %v1086_v31 = vadd.f32 %v1066_v62, %v1038_v8  ;;  %v1015_v62 = vld [vmem:[#allocation4 + $0x20] sm:$0xff] }
 0x2ef   : > { %v1031_v50 = vmul.f32 %v2681_v49, %v1015_v62 }
 0x2f0   : > { %1103 = vst.msk [vmem:[#allocation4 + $0x58] sm:$0xff] %vm1091_vm6, %v1086_v31  ;;  %v1017_v31 = vld [vmem:[#allocation4 + $0x30] sm:$0xff] }
 0x2f1   : > { %v1306_v29 = vpop.f32.mrf.mxu1  ;;  %v1033_v33 = vmul.f32 %v2707_v42, %v1017_v31  ;;  %v1018_v42 = vld [vmem:[#allocation4 + $0x38] sm:$0xff] }
 0x2f2   : > { %v1343_v60 = vadd.f32 %v1306_v29, %v1206_v38  ;;  %v1019_v38 = vld [vmem:[#allocation4 + $0x40] sm:$0xff]  ;;  %v1118_v29 = vld [vmem:[#allocation5 + $0x50] sm:$0xff] }
 0x2f4   : > { %1359 = vst.msk [vmem:[#allocation5 + $0x10] sm:$0xff] %vm693_vm5, %v1343_v60 }
 0x2f5   : > { %v1050_v25 = vpop.xlane.xlu2 %1049 }
 0x2f6   : > { %v1078_v26 = vadd.f32 %v1050_v25, %v1030_v61  ;;  %v1035_v61 = vmul.f32 %v2710_v16, %v1019_v38  ;;  %v1214_v25 = vmul.f32 %v2765_v18, %v1118_v29  ;;  %v1034_v18 = vmul.f32 %v2698_v10, %v1018_v42 }
 0x2f8   : > { %1095 = vst.msk [vmem:[#allocation4 + $0x18] sm:$0xff] %vm1091_vm6, %v1078_v26 }
 0x2f9   : > { %v1308_v45 = vpop.f32.mrf.mxu1 }
 0x2fa   : > { %v1344_v23 = vadd.f32 %v1308_v45, %v1207_v34 }
 0x2fc   : > { %1360 = vst.msk [vmem:[#allocation5 + $0x18] sm:$0xff] %vm693_vm5, %v1344_v23 }
 0x305   : > { %v1064_v55 = vpop.xlane.xlu1 %1063 }
 0x306   : > { %v1085_v58 = vadd.f32 %v1064_v55, %v1037_v3  ;;  %v1068_v52 = vpop.xlane.xlu0 %1067  ;;  %v1020_v3 = vld [vmem:[#allocation4 + $0x48] sm:$0xff]  ;;  %v1119_v55 = vld [vmem:[#allocation5 + $0x58] sm:$0xff] }
 0x307   : > { %v1087_v36 = vadd.f32 %v1068_v52, %v1039_v51  ;;  %v1036_v43 = vmul.f32 %v2722_v44, %v1020_v3  ;;  %v1113_v51 = vld [vmem:[#allocation5 + $0x28] sm:$0xff]  ;;  %v1120_v44 = vld [vmem:[#allocation5 + $0x60] sm:$0xff] }
 0x308   : > { %1102 = vst.msk [vmem:[#allocation4 + $0x50] sm:$0xff] %vm1091_vm6, %v1085_v58  ;;  %v1209_v46 = vmul.f32 %v2755_v12, %v1113_v51 }
 0x309   : > { %1104 = vst.msk [vmem:[#allocation4 + $0x60] sm:$0xff] %vm1091_vm6, %v1087_v36  ;;  %v1215_v36 = vmul.f32 %v2761_v7, %v1119_v55  ;;  %v1216_v7 = vmul.f32 %v2775_v59, %v1120_v44  ;;  %v1122_v59 = vld [vmem:[#allocation5 + $0x70] sm:$0xff] }
 0x30d   : > { %v1046_v39 = vpop.xlane.xlu1 %1045 }
 0x30e   : > { %v1076_v53 = vadd.f32 %v1046_v39, %v1028_v20  ;;  %v1072_v32 = vpop.xlane.xlu2 %1071  ;;  %v1074_v35 = vpop.xlane.xlu0 %1073 }
 0x30f   : > { %v1089_v63 = vadd.f32 %v1072_v32, %v1041_v57  ;;  %v1090_v48 = vadd.f32 %v1074_v35, %v1042_v28  ;;  %v1321_v54 = vpop.f32.mrf.mxu2  ;;  %v1114_v57 = vld [vmem:[#allocation5 + $0x30] sm:$0xff]  ;;  %v1115_v35 = vld [vmem:[#allocation5 + $0x38] sm:$0xff] }
 0x310   : > { %1093 = vst.msk [vmem:[#allocation4 + $0x8] sm:$0xff] %vm1091_vm6, %v1076_v53  ;;  %v1349_v4 = vadd.f32 %v1321_v54, %v1212_v47  ;;  %v1210_v47 = vmul.f32 %v2771_v27, %v1114_v57  ;;  %v1211_v54 = vmul.f32 %v2763_v15, %v1115_v35 }
 0x311   : > { %1106 = vst.msk [vmem:[#allocation4 + $0x70] sm:$0xff] %vm1091_vm6, %v1089_v63  ;;  %v1121_v63 = vld [vmem:[#allocation5 + $0x68] sm:$0xff] }
 0x312   : > { %1107 = vst.msk [vmem:[#allocation4 + $0x78] sm:$0xff] %vm1091_vm6, %v1090_v48 }
 0x313   : > { %1365 = vst.msk [vmem:[#allocation5 + $0x40] sm:$0xff] %vm693_vm5, %v1349_v4 }
 0x315   : > { %v1070_v56 = vpop.xlane.xlu1 %1069 }
 0x316   : > { %v1088_v13 = vadd.f32 %v1070_v56, %v1040_v24  ;;  %v1054_v14 = vpop.xlane.xlu2 %1053 }
 0x317   : > { %v1080_v30 = vadd.f32 %v1054_v14, %v1032_v17  ;;  %v1323_v8 = vpop.f32.mrf.mxu2 }
 0x318   : > { %1105 = vst.msk [vmem:[#allocation4 + $0x68] sm:$0xff] %vm1091_vm6, %v1088_v13  ;;  %v1350_v6 = vadd.f32 %v1323_v8, %v1213_v11  ;;  %v1123_v13 = vld [vmem:[#allocation5 + $0x78] sm:$0xff] }
 0x319   : > { %1097 = vst.msk [vmem:[#allocation4 + $0x28] sm:$0xff] %vm1091_vm6, %v1080_v30 }
 0x31a   : > { %1366 = vst.msk [vmem:[#allocation5 + $0x48] sm:$0xff] %vm693_vm5, %v1350_v6 }
 0x31d   : > { %v1052_v60 = vpop.xlane.xlu1 %1051  ;;  %v1056_v0 = vpop.xlane.xlu0 %1055 }
 0x31e   : > { %v1079_v26 = vadd.f32 %v1052_v60, %v1031_v50  ;;  %v1060_v34 = vpop.xlane.xlu2 %1059  ;;  %v1081_v45 = vadd.f32 %v1056_v0, %v1033_v33 }
 0x31f   : > { %v1083_v23 = vadd.f32 %v1060_v34, %v1035_v61  ;;  %v1326_v40 = vpop.f32.mrf.mxu2 }
 0x320   : > { %1096 = vst.msk [vmem:[#allocation4 + $0x20] sm:$0xff] %vm1091_vm6, %v1079_v26  ;;  %v1351_v1 = vadd.f32 %v1326_v40, %v1214_v25 }
 0x321   : > { %1100 = vst.msk [vmem:[#allocation4 + $0x40] sm:$0xff] %vm1091_vm6, %v1083_v23  ;;  %v1311_v49 = vpop.f32.mrf.mxu1 }
 0x322   : > { %1098 = vst.msk [vmem:[#allocation4 + $0x30] sm:$0xff] %vm1091_vm6, %v1081_v45  ;;  %v1345_v16 = vadd.f32 %v1311_v49, %v1208_v2 }
 0x323   : > { %1367 = vst.msk [vmem:[#allocation5 + $0x50] sm:$0xff] %vm693_vm5, %v1351_v1 }
 0x324   : > { %1361 = vst.msk [vmem:[#allocation5 + $0x20] sm:$0xff] %vm693_vm5, %v1345_v16 }
 0x325   : > { %v1058_v58 = vpop.xlane.xlu1 %1057  ;;  %v1062_v52 = vpop.xlane.xlu0 %1061 }
 0x326   : > { %v1082_v41 = vadd.f32 %v1058_v58, %v1034_v18  ;;  %v1084_v5 = vadd.f32 %v1062_v52, %v1036_v43  ;;  %v1197_v24 = vpop.permute.xlu2 %1196 }
 0x327   : > { %v1328_v37 = vpop.f32.mrf.mxu2  ;;  %v1218_v27 = vmul.f32 %v1197_v24, %v1122_v59 }
 0x328   : > { %1099 = vst.msk [vmem:[#allocation4 + $0x38] sm:$0xff] %vm1091_vm6, %v1082_v41  ;;  %v1352_v20 = vadd.f32 %v1328_v37, %v1215_v36 }
 0x329   : > { %1101 = vst.msk [vmem:[#allocation4 + $0x48] sm:$0xff] %vm1091_vm6, %v1084_v5  ;;  %v1313_v39 = vpop.f32.mrf.mxu1 }
 0x32a   : > { %1368 = vst.msk [vmem:[#allocation5 + $0x58] sm:$0xff] %vm693_vm5, %v1352_v20  ;;  %v1346_v10 = vadd.f32 %v1313_v39, %v1209_v46 }
 0x32c   : > { %1362 = vst.msk [vmem:[#allocation5 + $0x28] sm:$0xff] %vm693_vm5, %v1346_v10 }
 0x32f   : > { %v1331_v28 = vpop.f32.mrf.mxu2 }
 0x330   : > { %v1353_v53 = vadd.f32 %v1331_v28, %v1216_v7 }
 0x331   : > { %v1316_v12 = vpop.f32.mrf.mxu1 }
 0x332   : > { %1369 = vst.msk [vmem:[#allocation5 + $0x60] sm:$0xff] %vm693_vm5, %v1353_v53  ;;  %v1347_v32 = vadd.f32 %v1316_v12, %v1210_v47 }
 0x334   : > { %1363 = vst.msk [vmem:[#allocation5 + $0x30] sm:$0xff] %vm693_vm5, %v1347_v32 }
 0x337   : > { %v1333_v48 = vpop.f32.mrf.mxu2 }
 0x338   : > { %v1192_v4 = vpop.permute.xlu0 %1191 }
 0x339   : > { %v1217_v22 = vmul.f32 %v1192_v4, %v1121_v63  ;;  %v1318_v19 = vpop.f32.mrf.mxu1 }
 0x33a   : > { %v1348_v9 = vadd.f32 %v1318_v19, %v1211_v54 }
 0x33b   : > { %v1354_v56 = vadd.f32 %v1333_v48, %v1217_v22 }
 0x33c   : > { %1364 = vst.msk [vmem:[#allocation5 + $0x38] sm:$0xff] %vm693_vm5, %v1348_v9 }
 0x33d   : > { %1370 = vst.msk [vmem:[#allocation5 + $0x68] sm:$0xff] %vm693_vm5, %v1354_v56  ;;  %v1202_v14 = vpop.permute.xlu1 %1201 }
 0x33e   : > { %v1219_v30 = vmul.f32 %v1202_v14, %v1123_v13 }
 0x33f   : > { %v1336_v17 = vpop.f32.mrf.mxu2 }
 0x340   : > { %v1355_v11 = vadd.f32 %v1336_v17, %v1218_v27 }
 0x342   : > { %1371 = vst.msk [vmem:[#allocation5 + $0x70] sm:$0xff] %vm693_vm5, %v1355_v11 }
 0x346   : > { %1392 = sbr.rel (%p1914_p11) target bundleno = 1150 (0x47e), region = 56 }
 0x347   : > { %v1338_v15 = vpop.f32.mrf.mxu2 }
 0x348   : > { %v1356_v8 = vadd.f32 %v1338_v15, %v1219_v30 }
 0x34a   : > { %1372 = vst.msk [vmem:[#allocation5 + $0x78] sm:$0xff] %vm693_vm5, %v1356_v8 }
 0x34b   : > { %v1421_v6 = vld [vmem:[#allocation4 + $0x60] sm:$0xff]  ;;  %v2179_v38 = vmov 0   ;;  %v1422_v29 = vld [vmem:[#allocation4 + $0x68] sm:$0xff]  ;;  %v1419_v45 = vld [vmem:[#allocation4 + $0x50] sm:$0xff] }
 0x34c   : > { %v1417_v62 = vld [vmem:[#allocation4 + $0x40] sm:$0xff]  ;;  %2086 = vset.pattern.permute.xlu2 %v2179_v38  ;;  %2085 = vset.pattern.permute.xlu1 %v2179_v38  ;;  %2088 = vrcp.f32 %v1421_v6  ;;  %v1418_v50 = vld [vmem:[#allocation4 + $0x48] sm:$0xff]  ;;  %v1423_v40 = vld [vmem:[#allocation4 + $0x70] sm:$0xff] }
 0x34d   : > { %v1409_v31 = vld [vmem:[#allocation4] sm:$0xff]  ;;  %2084 = vset.pattern.permute.xlu0 %v2179_v38  ;;  %2090 = vrcp.f32 %v1417_v62  ;;  %v1410_v33 = vld [vmem:[#allocation4 + $0x8] sm:$0xff]  ;;  %v1420_v1 = vld [vmem:[#allocation4 + $0x58] sm:$0xff] }
 0x34e   : > { %2092 = vrcp.f32 %v1409_v31  ;;  %v1414_v0 = vld [vmem:[#allocation4 + $0x28] sm:$0xff]  ;;  %v1413_v26 = vld [vmem:[#allocation4 + $0x20] sm:$0xff]  ;;  %v1424_v42 = vld [vmem:[#allocation4 + $0x78] sm:$0xff] }
 0x34f   : > { %2094 = vrcp.f32 %v1422_v29  ;;  %v1412_v16 = vld [vmem:[#allocation4 + $0x18] sm:$0xff]  ;;  %v1411_v18 = vld [vmem:[#allocation4 + $0x10] sm:$0xff]  ;;  %v1545_v46 = vld [vmem:[%s2931_s5] sm:$0x3] }
 0x350   : > { %2096 = vrcp.f32 %v1418_v50  ;;  %v1415_v51 = vld [vmem:[#allocation4 + $0x30] sm:$0xff]  ;;  %v1416_v36 = vld [vmem:[#allocation4 + $0x38] sm:$0xff]  ;;  %v1573_v20 = vsel %vm718_vm4, %v1545_v46, 0  ;;  %v1393_v10 = vld [vmem:[#allocation5] sm:$0xff] }
 0x351   : > { %2098 = vrcp.f32 %v1410_v33  ;;  %1582 = vmatpush.bf16.msra.mxu0 %v1573_v20  ;;  %1954 = vmatpush.bf16.msra.mxu2 %v1573_v20  ;;  %v1394_v44 = vld [vmem:[#allocation5 + $0x8] sm:$0xff]  ;;  %v1405_v32 = vld [vmem:[#allocation5 + $0x60] sm:$0xff]  ;;  %v1408_v6 = vld [vmem:[#allocation5 + $0x78] sm:$0xff] }
 0x352   : > { %v2089_v21 = vpop.eup %2088  ;;  %2100 = vrcp.f32 %v1414_v0  ;;  %1955 = vmatpush.bf16.msra.mxu3 %v1573_v20  ;;  %1953 = vmatpush.bf16.msra.mxu1 %v1573_v20  ;;  %v1406_v35 = vld [vmem:[#allocation5 + $0x68] sm:$0xff]  ;;  %v1401_v48 = vld [vmem:[#allocation5 + $0x40] sm:$0xff]  ;;  %v1407_v62 = vld [vmem:[#allocation5 + $0x70] sm:$0xff] }
 0x353   : > { %v2091_v60 = vpop.eup %2090  ;;  %1503 = vperm.xlu1 %2085, %v2089_v21   ;;  %2102 = vrcp.f32 %v1413_v26  ;;  %v1402_v54 = vld [vmem:[#allocation5 + $0x48] sm:$0xff]  ;;  %v1397_v11 = vld [vmem:[#allocation5 + $0x20] sm:$0xff]  ;;  %v1403_v31 = vld [vmem:[#allocation5 + $0x50] sm:$0xff] }
 0x354   : > { %v2093_v61 = vpop.eup %2092  ;;  %1483 = vperm.xlu0 %2084, %v2091_v60   ;;  %2104 = vrcp.f32 %v1419_v45  ;;  %v1398_v17 = vld [vmem:[#allocation5 + $0x28] sm:$0xff]  ;;  %v1404_v38 = vld [vmem:[#allocation5 + $0x58] sm:$0xff]  ;;  %v1395_v45 = vld [vmem:[#allocation5 + $0x10] sm:$0xff] }
 0x355   : > { %1443 = vperm.xlu2 %2086, %v2093_v61   ;;  %v2095_v25 = vpop.eup %2094  ;;  %2106 = vrcp.f32 %v1423_v40  ;;  %v1625_v46 = vld [vmem:[%s2269_s19 + $0x8] sm:$0xff] }
 0x356   : > { %v2097_v34 = vpop.eup %2096  ;;  %2108 = vrcp.f32 %v1420_v1 }
 0x357   : > { %v2099_v23 = vpop.eup %2098  ;;  %2110 = vrcp.f32 %v1424_v42 }
 0x358   : > { %v2101_v2 = vpop.eup %2100  ;;  %2112 = vrcp.f32 %v1412_v16  ;;  %v1400_v16 = vld [vmem:[#allocation5 + $0x38] sm:$0xff] }
 0x359   : > { %v2103_v49 = vpop.eup %2102  ;;  %2114 = vrcp.f32 %v1411_v18 }
 0x35a   : > { %v2105_v3 = vpop.eup %2104  ;;  %2116 = vrcp.f32 %v1415_v51 }
 0x35b   : > { %1508 = vperm.xlu1 %2085, %v2095_v25   ;;  %v2107_v55 = vpop.eup %2106  ;;  %2118 = vrcp.f32 %v1416_v36  ;;  %v1624_v36 = vld [vmem:[%s2269_s19] sm:$0xff] }
 0x35c   : > { %1488 = vperm.xlu0 %2084, %v2097_v34   ;;  %v2109_v43 = vpop.eup %2108  ;;  %v1396_v34 = vld [vmem:[#allocation5 + $0x18] sm:$0xff] }
 0x35d   : > { %1448 = vperm.xlu2 %2086, %v2099_v23   ;;  %v2111_v58 = vpop.eup %2110 }
 0x35e   : > { %v2113_v52 = vpop.eup %2112 }
 0x35f   : > { %v2115_v41 = vpop.eup %2114 }
 0x360   : > { %v2117_v5 = vpop.eup %2116 }
 0x361   : > { %v2119_v37 = vpop.eup %2118 }
 0x363   : > { %1468 = vperm.xlu1 %2085, %v2101_v2  }
 0x364   : > { %1463 = vperm.xlu0 %2084, %v2103_v49  }
 0x365   : > { %1493 = vperm.xlu2 %2086, %v2105_v3   ;;  %v1399_v3 = vld [vmem:[#allocation5 + $0x30] sm:$0xff] }
 0x36b   : > { %1513 = vperm.xlu1 %2085, %v2107_v55  }
 0x36c   : > { %1498 = vperm.xlu0 %2084, %v2109_v43  }
 0x36d   : > { %1518 = vperm.xlu2 %2086, %v2111_v58   ;;  %v2839_v58 = vld [vmem:[%s2932_s6 + $0x1] ss:$0 sm:$0xff] }
 0x373   : > { %1458 = vperm.xlu1 %2085, %v2113_v52  }
 0x374   : > { %1453 = vperm.xlu0 %2084, %v2115_v41  }
 0x375   : > { %1473 = vperm.xlu2 %2086, %v2117_v5  }
 0x37c   : > { %1478 = vperm.xlu0 %2084, %v2119_v37  }
 0x3af   : > { %v1444_v39 = vpop.permute.xlu2 %1443 }
 0x3b0   : > { %v1521_v57 = vmul.f32 %v1444_v39, %v1393_v10 }
 0x3b7   : > { %v1449_v7 = vpop.permute.xlu2 %1448 }
 0x3b8   : > { %v1522_v28 = vmul.f32 %v1449_v7, %v1394_v44  ;;  %v1636_v44 = vld [vmem:[%s2269_s19 + $0x60] sm:$0xff] }
 0x3b9   : > { %v1632_v7 = vld [vmem:[%s2269_s19 + $0x40] sm:$0xff] }
 0x3ba   : > { %v1537_v47 = vpack.c.bf16 %v1522_v28, %v1521_v57 }
 0x3bc   : > { %1915 = vmatmul.msk.bf16.vlgmr.msra.gmra.mxu0 %vm693_vm5, %v1537_v47 }
 0x3bf   : > { %v1494_v27 = vpop.permute.xlu2 %1493 }
 0x3c0   : > { %v1531_v61 = vmul.f32 %v1494_v27, %v1403_v31  ;;  %v1629_v27 = vld [vmem:[%s2269_s19 + $0x28] sm:$0xff] }
 0x3c5   : > { %v1504_v53 = vpop.permute.xlu1 %1503 }
 0x3c6   : > { %v1484_v12 = vpop.permute.xlu0 %1483  ;;  %v1533_v63 = vmul.f32 %v1504_v53, %v1405_v32  ;;  %v1628_v32 = vld [vmem:[%s2269_s19 + $0x20] sm:$0xff] }
 0x3c7   : > { %v1529_v9 = vmul.f32 %v1484_v12, %v1401_v48  ;;  %v1519_v29 = vpop.permute.xlu2 %1518 }
 0x3c8   : > { %v1536_v33 = vmul.f32 %v1519_v29, %v1408_v6  ;;  %v1626_v29 = vld [vmem:[%s2269_s19 + $0x10] sm:$0xff] }
 0x3cd   : > { %v1509_v4 = vpop.permute.xlu1 %1508 }
 0x3ce   : > { %v1534_v22 = vmul.f32 %v1509_v4, %v1406_v35  ;;  %v1489_v19 = vpop.permute.xlu0 %1488  ;;  %v1637_v4 = vld [vmem:[%s2269_s19 + $0x68] sm:$0xff] }
 0x3cf   : > { %v1530_v59 = vmul.f32 %v1489_v19, %v1402_v54  ;;  %v1474_v42 = vpop.permute.xlu2 %1473  ;;  %v1633_v19 = vld [vmem:[%s2269_s19 + $0x48] sm:$0xff] }
 0x3d0   : > { %v1543_v24 = vpack.c.bf16 %v1534_v22, %v1533_v63  ;;  %v1527_v18 = vmul.f32 %v1474_v42, %v1399_v3 }
 0x3d1   : > { %v1541_v56 = vpack.c.bf16 %v1530_v59, %v1529_v9 }
 0x3d2   : > { %1921 = vmatmul.msk.bf16.vlgmr.msra.gmra.mxu3 %vm693_vm5, %v1543_v24 }
 0x3d3   : > { %1919 = vmatmul.msk.bf16.vlgmr.msra.gmra.mxu2 %vm693_vm5, %v1541_v56 }
 0x3d5   : > { %v1469_v13 = vpop.permute.xlu1 %1468 }
 0x3d6   : > { %v1526_v14 = vmul.f32 %v1469_v13, %v1398_v17  ;;  %v1464_v30 = vpop.permute.xlu0 %1463 }
 0x3d7   : > { %v1525_v15 = vmul.f32 %v1464_v30, %v1397_v11  ;;  %v1638_v30 = vld [vmem:[%s2269_s19 + $0x70] sm:$0xff] }
 0x3d9   : > { %v1539_v8 = vpack.c.bf16 %v1526_v14, %v1525_v15 }
 0x3db   : > { %1917 = vmatmul.msk.bf16.vlgmr.msra.gmra.mxu1 %vm693_vm5, %v1539_v8  ;;  %v1634_v8 = vld [vmem:[%s2269_s19 + $0x50] sm:$0xff] }
 0x3dd   : > { %v1514_v50 = vpop.permute.xlu1 %1513 }
 0x3de   : > { %v1535_v21 = vmul.f32 %v1514_v50, %v1407_v62  ;;  %v1499_v60 = vpop.permute.xlu0 %1498 }
 0x3df   : > { %v1532_v0 = vmul.f32 %v1499_v60, %v1404_v38 }
 0x3e0   : > { %v1544_v25 = vpack.c.bf16 %v1536_v33, %v1535_v21 }
 0x3e1   : > { %v1542_v26 = vpack.c.bf16 %v1532_v0, %v1531_v61  ;;  %v1639_v61 = vld [vmem:[%s2269_s19 + $0x78] sm:$0xff] }
 0x3e2   : > { %1922 = vmatmul.msk.bf16.gmra.mxu3 %vm693_vm5, %v1544_v25  ;;  %v1635_v25 = vld [vmem:[%s2269_s19 + $0x58] sm:$0xff] }
 0x3e3   : > { %1920 = vmatmul.msk.bf16.gmra.mxu2 %vm693_vm5, %v1542_v26 }
 0x3e5   : > { %v1459_v23 = vpop.permute.xlu1 %1458 }
 0x3e6   : > { %v1524_v40 = vmul.f32 %v1459_v23, %v1396_v34  ;;  %v1454_v2 = vpop.permute.xlu0 %1453 }
 0x3e7   : > { %v1523_v1 = vmul.f32 %v1454_v2, %v1395_v45 }
 0x3e9   : > { %v1538_v49 = vpack.c.bf16 %v1524_v40, %v1523_v1  ;;  %v1627_v40 = vld [vmem:[%s2269_s19 + $0x18] sm:$0xff]  ;;  %v1630_v1 = vld [vmem:[%s2269_s19 + $0x30] sm:$0xff] }
 0x3eb   : > { %1916 = vmatmul.msk.bf16.gmra.mxu0 %vm693_vm5, %v1538_v49 }
 0x3ee   : > { %v1479_v55 = vpop.permute.xlu0 %1478 }
 0x3ef   : > { %v1528_v43 = vmul.f32 %v1479_v55, %v1400_v16 }
 0x3f1   : > { %v1540_v51 = vpack.c.bf16 %v1528_v43, %v1527_v18  ;;  %v1631_v43 = vld [vmem:[%s2269_s19 + $0x38] sm:$0xff] }
 0x3f3   : > { %1918 = vmatmul.msk.bf16.gmra.mxu1 %vm693_vm5, %v1540_v51 }
 0x439   : > { %v1584_v52 = vpop.f32.mrf.mxu0 }
 0x43a   : > { %v1585_v41 = vadd.f32 %v2839_v58, %v1584_v52 }
 0x43c   : > { %v1640_v5 = vadd.f32 %v1624_v36, %v1585_v41 }
 0x43e   : > { %1656 = vst.msk [vmem:[%s2278_s26] sm:$0xff] %vm693_vm5, %v1640_v5 }
 0x441   : > { %v1586_v37 = vpop.f32.mrf.mxu0 }
 0x442   : > { %v1587_v20 = vadd.f32 %v2839_v58, %v1586_v37 }
 0x444   : > { %v1641_v39 = vadd.f32 %v1625_v46, %v1587_v20 }
 0x446   : > { %1657 = vst.msk [vmem:[%s2278_s26 + $0x8] sm:$0xff] %vm693_vm5, %v1641_v39 }
 0x455   : > { %v1614_v10 = vpop.f32.mrf.mxu3 }
 0x456   : > { %v1604_v57 = vpop.f32.mrf.mxu2  ;;  %v1615_v28 = vadd.f32 %v2839_v58, %v1614_v10 }
 0x457   : > { %v1605_v47 = vadd.f32 %v2839_v58, %v1604_v57 }
 0x458   : > { %v1652_v53 = vadd.f32 %v1636_v44, %v1615_v28  ;;  %v1594_v12 = vpop.f32.mrf.mxu1 }
 0x459   : > { %v1648_v35 = vadd.f32 %v1632_v7, %v1605_v47  ;;  %v1595_v63 = vadd.f32 %v2839_v58, %v1594_v12 }
 0x45a   : > { %1668 = vst.msk [vmem:[%s2278_s26 + $0x60] sm:$0xff] %vm693_vm5, %v1652_v53 }
 0x45b   : > { %1664 = vst.msk [vmem:[%s2278_s26 + $0x40] sm:$0xff] %vm693_vm5, %v1648_v35  ;;  %v1644_v48 = vadd.f32 %v1628_v32, %v1595_v63 }
 0x45d   : > { %1660 = vst.msk [vmem:[%s2278_s26 + $0x20] sm:$0xff] %vm693_vm5, %v1644_v48  ;;  %v1616_v54 = vpop.f32.mrf.mxu3 }
 0x45e   : > { %v1606_v22 = vpop.f32.mrf.mxu2  ;;  %v1617_v9 = vadd.f32 %v2839_v58, %v1616_v54 }
 0x45f   : > { %v1607_v59 = vadd.f32 %v2839_v58, %v1606_v22 }
 0x460   : > { %v1653_v24 = vadd.f32 %v1637_v4, %v1617_v9  ;;  %v1596_v56 = vpop.f32.mrf.mxu1 }
 0x461   : > { %v1649_v17 = vadd.f32 %v1633_v19, %v1607_v59  ;;  %v1597_v11 = vadd.f32 %v2839_v58, %v1596_v56 }
 0x462   : > { %1669 = vst.msk [vmem:[%s2278_s26 + $0x68] sm:$0xff] %vm693_vm5, %v1653_v24 }
 0x463   : > { %1665 = vst.msk [vmem:[%s2278_s26 + $0x48] sm:$0xff] %vm693_vm5, %v1649_v17  ;;  %v1645_v13 = vadd.f32 %v1629_v27, %v1597_v11 }
 0x465   : > { %1661 = vst.msk [vmem:[%s2278_s26 + $0x28] sm:$0xff] %vm693_vm5, %v1645_v13  ;;  %v1619_v14 = vpop.f32.mrf.mxu3 }
 0x466   : > { %v1609_v15 = vpop.f32.mrf.mxu2  ;;  %v1620_v6 = vadd.f32 %v2839_v58, %v1619_v14 }
 0x467   : > { %v1610_v62 = vadd.f32 %v2839_v58, %v1609_v15 }
 0x468   : > { %v1654_v31 = vadd.f32 %v1638_v30, %v1620_v6  ;;  %v1589_v38 = vpop.f32.mrf.mxu0 }
 0x469   : > { %v1650_v50 = vadd.f32 %v1634_v8, %v1610_v62  ;;  %v1590_v33 = vadd.f32 %v2839_v58, %v1589_v38 }
 0x46a   : > { %1670 = vst.msk [vmem:[%s2278_s26 + $0x70] sm:$0xff] %vm693_vm5, %v1654_v31 }
 0x46b   : > { %1666 = vst.msk [vmem:[%s2278_s26 + $0x50] sm:$0xff] %vm693_vm5, %v1650_v50  ;;  %v1642_v21 = vadd.f32 %v1626_v29, %v1590_v33 }
 0x46d   : > { %1658 = vst.msk [vmem:[%s2278_s26 + $0x10] sm:$0xff] %vm693_vm5, %v1642_v21  ;;  %v1621_v60 = vpop.f32.mrf.mxu3 }
 0x46e   : > { %v1611_v0 = vpop.f32.mrf.mxu2  ;;  %v1622_v26 = vadd.f32 %v2839_v58, %v1621_v60 }
 0x46f   : > { %v1612_v34 = vadd.f32 %v2839_v58, %v1611_v0 }
 0x470   : > { %v1655_v45 = vadd.f32 %v1639_v61, %v1622_v26  ;;  %v1591_v23 = vpop.f32.mrf.mxu0  ;;  %v1599_v2 = vpop.f32.mrf.mxu1 }
 0x471   : > { %v1651_v49 = vadd.f32 %v1635_v25, %v1612_v34  ;;  %v1592_v42 = vadd.f32 %v2839_v58, %v1591_v23  ;;  %v1600_v3 = vadd.f32 %v2839_v58, %v1599_v2 }
 0x472   : > { %1671 = vst.msk [vmem:[%s2278_s26 + $0x78] sm:$0xff] %vm693_vm5, %v1655_v45 }
 0x473   : > { %1667 = vst.msk [vmem:[%s2278_s26 + $0x58] sm:$0xff] %vm693_vm5, %v1651_v49  ;;  %v1643_v16 = vadd.f32 %v1627_v40, %v1592_v42  ;;  %v1646_v55 = vadd.f32 %v1630_v1, %v1600_v3 }
 0x475   : > { %1659 = vst.msk [vmem:[%s2278_s26 + $0x18] sm:$0xff] %vm693_vm5, %v1643_v16 }
 0x476   : > { %1662 = vst.msk [vmem:[%s2278_s26 + $0x30] sm:$0xff] %vm693_vm5, %v1646_v55 }
 0x478   : > { %v1601_v18 = vpop.f32.mrf.mxu1 }
 0x479   : > { %v1602_v51 = vadd.f32 %v2839_v58, %v1601_v18 }
 0x47b   : > { %v1647_v52 = vadd.f32 %v1631_v43, %v1602_v51 }
 0x47d   : > { %1663 = vst.msk [vmem:[%s2278_s26 + $0x38] sm:$0xff] %vm693_vm5, %v1647_v52 }
 0x47e PF: > { %s17_s30 = sadd.s32 1, %s2174_s30   ;;  %s2943_s25 = sld [smem:[#allocation6_spill]] }
 0x47f   : > { %p14_p12 = scmp.ge.s32.totalorder %s17_s30, 10   ;;  %s2944_s26 = sld [smem:[#allocation7_spill]] }
 0x480   : > { %s2945_s12 = sld [smem:[#allocation8_spill]]  ;;  %s2948_s24 = smov %s2162_s27 }
 0x481   : > { %s2946_s28 = sld [smem:[#allocation9_spill]] }
 0x482   : > { %s2947_s29 = sld [smem:[#allocation10_spill]]  ;;  %16 = sbr.rel (!%p14_p12) target bundleno = 4 (0x4), region = 95 }
 0x486   : > { %s2949_s27 = smov %s2945_s12 }

</bundles_post_ra>
